<compile_context>
chip_gen: v5e
topology: v5e:2x2
jax: 0.10.0
libtpu: 0.0.40
codegen_flags: <defaults>
</compile_context>

<pallas_src>
import math

import jax
import jax.numpy as jnp
from jax.experimental import pallas as pl
from jax.experimental.pallas import tpu as pltpu

# ---- synthetic "DistilBERT-mini" config (distilbert-base downsized for the demo) ----
B = 2          # batch
S = 8          # sequence length
H = 128        # hidden size (768 in distilbert-base; 128 keeps the lane dim full)
NH = 4         # attention heads
HD = H // NH   # head dim
I = 256        # FFN intermediate size (3072 in distilbert-base)
L = 2          # encoder layers (6 in distilbert-base)
V = 64         # vocab size
C = 4          # classifier classes (nn.Linear(768, 4))
CP = 128       # lane-padded classifier width

F32 = jnp.float32
BF16 = jnp.bfloat16
NEG = -1e9


# --------------------------- in-kernel helpers ---------------------------

def _layernorm(x, gamma, beta, eps=1e-12):
    mu = jnp.mean(x, axis=-1, keepdims=True)
    xc = x - mu
    var = jnp.mean(xc * xc, axis=-1, keepdims=True)
    return xc * jax.lax.rsqrt(var + eps) * gamma + beta


def _gelu_tanh(x):
    c = math.sqrt(2.0 / math.pi)
    return 0.5 * x * (1.0 + jnp.tanh(c * (x + 0.044715 * x * x * x)))


# ------------------------------ fused Pallas kernel ------------------------------

def distilbert_kernel(emb_ref, mask_ref, embg_ref, embb_ref,
                      wqkv_ref, bqkv_ref, wo_ref, bo_ref, g1_ref, be1_ref,
                      w1_ref, b1_ref, w2_ref, b2_ref, g2_ref, be2_ref,
                      wp_ref, bp_ref, wc_ref, bc_ref,
                      o_ref, h_ref):
    # grid axis 0 = encoder layer index ("arbitrary": sequential, scratch persists)
    lyr = pl.program_id(0)

    # ---- layer 0: embedding LayerNorm into the resident activation scratch ----
    @pl.when(lyr == 0)
    def _():
        h_ref[...] = _layernorm(emb_ref[...], embg_ref[...], embb_ref[...])

    x = h_ref[...]                                                    # (B*S, H) f32

    # ---- fused QKV projection, whole batch in one (B*S,H)@(H,3H) matmul ----
    qkv = jnp.dot(x.astype(BF16), wqkv_ref[...],
                  preferred_element_type=F32) + bqkv_ref[...]         # (B*S, 3H)

    scale = 1.0 / math.sqrt(HD)
    ctx_rows = []
    for b in range(B):                      # static loop: attention part is per batch
        qkv_b = qkv[b * S:(b + 1) * S, :]                             # (S, 3H)
        q = qkv_b[:, 0:H] * scale
        k = qkv_b[:, H:2 * H]
        v = qkv_b[:, 2 * H:3 * H]
        bias = (1.0 - mask_ref[b]) * NEG                              # (1, S) additive

        heads = []
        for hh in range(NH):
            qh = q[:, hh * HD:(hh + 1) * HD]                          # (S, HD)
            kh = k[:, hh * HD:(hh + 1) * HD]
            vh = v[:, hh * HD:(hh + 1) * HD]
            s = jax.lax.dot_general(qh, kh, (((1,), (1,)), ((), ())),
                                    preferred_element_type=F32)       # (S, S)
            s = s + bias
            s = s - jnp.max(s, axis=-1, keepdims=True)
            p = jnp.exp(s)
            p = p * pl.reciprocal(jnp.sum(p, axis=-1, keepdims=True), approx=True)
            heads.append(jnp.dot(p, vh, preferred_element_type=F32))  # (S, HD)
        ctx_rows.append(jnp.concatenate(heads, axis=-1))              # (S, H) lane concat
    ctx = jnp.concatenate(ctx_rows, axis=0)                           # (B*S, H)

    # ---- output projection (single K=128 matmul) + post-attention LN ----
    attn = jnp.dot(ctx.astype(BF16), wo_ref[...],
                   preferred_element_type=F32) + bo_ref[...]
    h1 = _layernorm(x + attn, g1_ref[...], be1_ref[...])

    # ---- FFN + post-FFN LN (whole batch) ----
    ff = _gelu_tanh(jnp.dot(h1.astype(BF16), w1_ref[...],
                            preferred_element_type=F32) + b1_ref[...])
    ff = jnp.dot(ff.astype(BF16), w2_ref[...],
                 preferred_element_type=F32) + b2_ref[...]
    h_new = _layernorm(h1 + ff, g2_ref[...], be2_ref[...])
    h_ref[...] = h_new

    # ---- classifier head at the last layer ----
    @pl.when(lyr == L - 1)
    def _():
        cls = jnp.concatenate([h_new[b * S:b * S + 1, :] for b in range(B)],
                              axis=0)                                 # (B, H) [CLS] rows
        pooled = jnp.tanh(jnp.dot(cls.astype(BF16), wp_ref[...],
                                  preferred_element_type=F32) + bp_ref[...])
        # nn.Dropout(0.1) is identity in eval mode
        o_ref[...] = jnp.dot(pooled.astype(BF16), wc_ref[...],
                             preferred_element_type=F32) + bc_ref[...]  # (B, CP)


# ------------------------------ pallas_call glue ------------------------------

def _resident(shape):
    # block = full array, same block every layer -> DMA'd once, stays in VMEM
    nd = len(shape)
    return pl.BlockSpec(shape, lambda l, _nd=nd: (0,) * _nd)


def _per_layer(shape_tail):
    # stacked (L, ...) weight: stream one layer's slice per grid step
    nd = len(shape_tail)
    return pl.BlockSpec((None,) + shape_tail,
                        lambda l, _nd=nd: (l,) + (0,) * _nd)


def distilbert_forward(params, input_ids, attention_mask):
    # embeddings (gathers are glue in plain JAX); DistilBERT: word + position only
    we = jnp.take(params["word_emb"], input_ids, axis=0)              # (B, S, H)
    pe = params["pos_emb"][None, :, :]                                # (1, S, H)
    emb = (we + pe).reshape(B * S, H).astype(F32)                     # (B*S, H)
    mask_f = attention_mask.astype(F32).reshape(B, 1, S)              # (B, 1, S)

    grid_spec = pltpu.PrefetchScalarGridSpec(
        num_scalar_prefetch=0,
        grid=(L,),
        in_specs=[
            _resident((B * S, H)),        # emb
            _resident((B, 1, S)),         # attention mask (0/1 as f32)
            _resident((1, H)),            # emb LN gamma
            _resident((1, H)),            # emb LN beta
            _per_layer((H, 3 * H)),       # wqkv
            _per_layer((1, 3 * H)),       # bqkv
            _per_layer((H, H)),           # wo
            _per_layer((1, H)),           # bo
            _per_layer((1, H)),           # ln1 gamma
            _per_layer((1, H)),           # ln1 beta
            _per_layer((H, I)),           # w1
            _per_layer((1, I)),           # b1
            _per_layer((I, H)),           # w2
            _per_layer((1, H)),           # b2
            _per_layer((1, H)),           # ln2 gamma
            _per_layer((1, H)),           # ln2 beta
            _resident((H, H)),            # pre_classifier W
            _resident((1, H)),            # pre_classifier b
            _resident((H, CP)),           # classifier W (lane-padded)
            _resident((1, CP)),           # classifier b (lane-padded)
        ],
        out_specs=pl.BlockSpec((B, CP), lambda l: (0, 0)),
        scratch_shapes=[pltpu.VMEM((B * S, H), F32)],
    )

    out_padded = pl.pallas_call(
        distilbert_kernel,
        out_shape=jax.ShapeDtypeStruct((B, CP), F32),
        grid_spec=grid_spec,
        compiler_params=pltpu.CompilerParams(
            dimension_semantics=("arbitrary",)),
    )(emb, mask_f, params["emb_ln_g"], params["emb_ln_b"],
      params["wqkv"], params["bqkv"], params["wo"], params["bo"],
      params["ln1_g"], params["ln1_b"], params["w1"], params["b1"],
      params["w2"], params["b2"], params["ln2_g"], params["ln2_b"],
      params["wp"], params["bp"], params["wc"], params["bc"])

    return out_padded[:, :C]                                          # (B, 4) logits


# ------------------------------ params ------------------------------

def init_params(key):
    keys = iter(jax.random.split(key, 16))

    def normal(shape, std=0.02, dtype=BF16):
        return (std * jax.random.normal(next(keys), shape, dtype=F32)).astype(dtype)

    wc_raw = normal((H, C), dtype=F32)
    wc_pad = jnp.zeros((H, CP), F32).at[:, :C].set(wc_raw).astype(BF16)

    return {
        "word_emb": normal((V, H), dtype=F32),
        "pos_emb": normal((S, H), dtype=F32),
        "emb_ln_g": jnp.ones((1, H), F32),
        "emb_ln_b": jnp.zeros((1, H), F32),
        # per-layer weights stacked along a leading L axis (streamed by the grid)
        "wqkv": normal((L, H, 3 * H)),
        "bqkv": jnp.zeros((L, 1, 3 * H), F32),
        "wo": normal((L, H, H)),
        "bo": jnp.zeros((L, 1, H), F32),
        "ln1_g": jnp.ones((L, 1, H), F32),
        "ln1_b": jnp.zeros((L, 1, H), F32),
        "w1": normal((L, H, I)),
        "b1": jnp.zeros((L, 1, I), F32),
        "w2": normal((L, I, H)),
        "b2": jnp.zeros((L, 1, H), F32),
        "ln2_g": jnp.ones((L, 1, H), F32),
        "ln2_b": jnp.zeros((L, 1, H), F32),
        # head: pre_classifier Linear(H,H) + classifier Linear(H,4) (lane-padded)
        "wp": normal((H, H)),
        "bp": jnp.zeros((1, H), F32),
        "wc": wc_pad,
        "bc": jnp.zeros((1, CP), F32),
    }


if __name__ == "__main__":
    key = jax.random.PRNGKey(0)
    kp, ki = jax.random.split(key, 2)
    params = init_params(kp)

    input_ids = jax.random.randint(ki, (B, S), 0, V, dtype=jnp.int32)
    attention_mask = jnp.ones((B, S), dtype=jnp.int32).at[:, S - 2:].set(0)  # pad last 2

    out = jax.jit(distilbert_forward)(params, input_ids, attention_mask)
    out = jax.block_until_ready(out)

    assert out.shape == (B, C), out.shape
    assert bool(jnp.all(jnp.isfinite(out)))   # raw logits (no sigmoid in the spec)
    print("KERNEL_OK")
</pallas_src>

<mosaic_0001>
module attributes {stable_mosaic.version = 11 : i64} {
  func.func @distilbert_kernel(%arg0: i32, %arg1: memref<16x128xf32, #tpu.memory_space<vmem>>, %arg2: memref<2x1x8xf32, #tpu.memory_space<vmem>>, %arg3: memref<1x128xf32, #tpu.memory_space<vmem>>, %arg4: memref<1x128xf32, #tpu.memory_space<vmem>>, %arg5: memref<1x128x384xbf16, #tpu.memory_space<vmem>>, %arg6: memref<1x1x384xf32, #tpu.memory_space<vmem>>, %arg7: memref<1x128x128xbf16, #tpu.memory_space<vmem>>, %arg8: memref<1x1x128xf32, #tpu.memory_space<vmem>>, %arg9: memref<1x1x128xf32, #tpu.memory_space<vmem>>, %arg10: memref<1x1x128xf32, #tpu.memory_space<vmem>>, %arg11: memref<1x128x256xbf16, #tpu.memory_space<vmem>>, %arg12: memref<1x1x256xf32, #tpu.memory_space<vmem>>, %arg13: memref<1x256x128xbf16, #tpu.memory_space<vmem>>, %arg14: memref<1x1x128xf32, #tpu.memory_space<vmem>>, %arg15: memref<1x1x128xf32, #tpu.memory_space<vmem>>, %arg16: memref<1x1x128xf32, #tpu.memory_space<vmem>>, %arg17: memref<128x128xbf16, #tpu.memory_space<vmem>>, %arg18: memref<1x128xf32, #tpu.memory_space<vmem>>, %arg19: memref<128x128xbf16, #tpu.memory_space<vmem>>, %arg20: memref<1x128xf32, #tpu.memory_space<vmem>>, %arg21: memref<2x128xf32, #tpu.memory_space<vmem>>, %arg22: memref<16x128xf32, #tpu.memory_space<vmem>>) attributes {dimension_semantics = [#tpu.dimension_semantics<arbitrary>], iteration_bounds = array<i64: 2>, scalar_prefetch = 0 : i64, scratch_operands = 1 : i64, tpu.core_type = #tpu.core_type<tc>, window_params = [{pipeline_mode = #tpu.pipeline_mode<synchronous>, transform_indices = @transform_0, window_bounds = array<i64: 16, 128>}, {pipeline_mode = #tpu.pipeline_mode<synchronous>, transform_indices = @transform_1, window_bounds = array<i64: 2, 1, 8>}, {pipeline_mode = #tpu.pipeline_mode<synchronous>, transform_indices = @transform_2, window_bounds = array<i64: 1, 128>}, {pipeline_mode = #tpu.pipeline_mode<synchronous>, transform_indices = @transform_3, window_bounds = array<i64: 1, 128>}, {transform_indices = @transform_4, window_bounds = array<i64: 1, 128, 384>}, {transform_indices = @transform_5, window_bounds = array<i64: 1, 1, 384>}, {transform_indices = @transform_6, window_bounds = array<i64: 1, 128, 128>}, {transform_indices = @transform_7, window_bounds = array<i64: 1, 1, 128>}, {transform_indices = @transform_8, window_bounds = array<i64: 1, 1, 128>}, {transform_indices = @transform_9, window_bounds = array<i64: 1, 1, 128>}, {transform_indices = @transform_10, window_bounds = array<i64: 1, 128, 256>}, {transform_indices = @transform_11, window_bounds = array<i64: 1, 1, 256>}, {transform_indices = @transform_12, window_bounds = array<i64: 1, 256, 128>}, {transform_indices = @transform_13, window_bounds = array<i64: 1, 1, 128>}, {transform_indices = @transform_14, window_bounds = array<i64: 1, 1, 128>}, {transform_indices = @transform_15, window_bounds = array<i64: 1, 1, 128>}, {pipeline_mode = #tpu.pipeline_mode<synchronous>, transform_indices = @transform_16, window_bounds = array<i64: 128, 128>}, {pipeline_mode = #tpu.pipeline_mode<synchronous>, transform_indices = @transform_17, window_bounds = array<i64: 1, 128>}, {pipeline_mode = #tpu.pipeline_mode<synchronous>, transform_indices = @transform_18, window_bounds = array<i64: 128, 128>}, {pipeline_mode = #tpu.pipeline_mode<synchronous>, transform_indices = @transform_19, window_bounds = array<i64: 1, 128>}, {pipeline_mode = #tpu.pipeline_mode<synchronous>, transform_indices = @transform_20, window_bounds = array<i64: 2, 128>}]} {
    %c0_i32 = arith.constant 0 : i32
    %0 = arith.cmpi eq, %arg0, %c0_i32 : i32
    %1 = arith.extui %0 : i1 to i32
    %c0_i32_0 = arith.constant 0 : i32
    %2 = arith.cmpi ne, %1, %c0_i32_0 : i32
    scf.if %2 {
      %c0_101 = arith.constant 0 : index
      %c0_102 = arith.constant 0 : index
      %266 = vector.load %arg1[%c0_101, %c0_102] : memref<16x128xf32, #tpu.memory_space<vmem>>, vector<16x128xf32>
      %c0_103 = arith.constant 0 : index
      %c0_104 = arith.constant 0 : index
      %267 = vector.load %arg3[%c0_103, %c0_104] : memref<1x128xf32, #tpu.memory_space<vmem>>, vector<1x128xf32>
      %c0_105 = arith.constant 0 : index
      %c0_106 = arith.constant 0 : index
      %268 = vector.load %arg4[%c0_105, %c0_106] : memref<1x128xf32, #tpu.memory_space<vmem>>, vector<1x128xf32>
      %cst_107 = arith.constant dense<0.000000e+00> : vector<16xf32>
      %269 = vector.multi_reduction <add>, %266, %cst_107 [1] : vector<16x128xf32> to vector<16xf32>
      %270 = vector.shape_cast %269 : vector<16xf32> to vector<16x1xf32>
      %cst_108 = arith.constant 1.280000e+02 : f32
      %271 = vector.broadcast %cst_108 : f32 to vector<16x1xf32>
      %272 = arith.divf %270, %271 : vector<16x1xf32>
      %273 = vector.broadcast %272 : vector<16x1xf32> to vector<16x128xf32>
      %274 = arith.subf %266, %273 : vector<16x128xf32>
      %275 = arith.mulf %274, %274 : vector<16x128xf32>
      %cst_109 = arith.constant dense<0.000000e+00> : vector<16xf32>
      %276 = vector.multi_reduction <add>, %275, %cst_109 [1] : vector<16x128xf32> to vector<16xf32>
      %277 = vector.shape_cast %276 : vector<16xf32> to vector<16x1xf32>
      %cst_110 = arith.constant 1.280000e+02 : f32
      %278 = vector.broadcast %cst_110 : f32 to vector<16x1xf32>
      %279 = arith.divf %277, %278 : vector<16x1xf32>
      %cst_111 = arith.constant 9.99999996E-13 : f32
      %280 = vector.broadcast %cst_111 : f32 to vector<16x1xf32>
      %281 = arith.addf %279, %280 : vector<16x1xf32>
      %282 = math.rsqrt %281 : vector<16x1xf32>
      %283 = vector.broadcast %282 : vector<16x1xf32> to vector<16x128xf32>
      %284 = arith.mulf %274, %283 : vector<16x128xf32>
      %285 = vector.broadcast %267 : vector<1x128xf32> to vector<16x128xf32>
      %286 = arith.mulf %284, %285 : vector<16x128xf32>
      %287 = vector.broadcast %268 : vector<1x128xf32> to vector<16x128xf32>
      %288 = arith.addf %286, %287 : vector<16x128xf32>
      %c0_112 = arith.constant 0 : index
      %c0_113 = arith.constant 0 : index
      %289 = vector.load %arg22[%c0_112, %c0_113] : memref<16x128xf32, #tpu.memory_space<vmem>>, vector<16x128xf32>
      tpu.vector_store %arg22[%c0_112, %c0_113], %288 {strides = array<i32>} : memref<16x128xf32, #tpu.memory_space<vmem>>, vector<16x128xf32>,
    } else {
    }
    %c0 = arith.constant 0 : index
    %c0_1 = arith.constant 0 : index
    %3 = vector.load %arg22[%c0, %c0_1] : memref<16x128xf32, #tpu.memory_space<vmem>>, vector<16x128xf32>
    %4 = arith.truncf %3 : vector<16x128xf32> to vector<16x128xbf16>
    %c0_2 = arith.constant 0 : index
    %c0_3 = arith.constant 0 : index
    %c0_4 = arith.constant 0 : index
    %5 = vector.load %arg5[%c0_2, %c0_3, %c0_4] : memref<1x128x384xbf16, #tpu.memory_space<vmem>>, vector<1x128x384xbf16>
    %6 = vector.shape_cast %5 : vector<1x128x384xbf16> to vector<128x384xbf16>
    %cst = arith.constant dense<0.000000e+00> : vector<16x384xf32>
    %7 = tpu.matmul %4, %6, %cst {dimension_numbers = #tpu.dot_dimension_numbers<[1], [0], [0], [1], [0, 0, 1, 1], [], []>} : vector<16x128xbf16>, vector<128x384xbf16>, vector<16x384xf32> -> vector<16x384xf32>
    %c0_5 = arith.constant 0 : index
    %c0_6 = arith.constant 0 : index
    %c0_7 = arith.constant 0 : index
    %8 = vector.load %arg6[%c0_5, %c0_6, %c0_7] : memref<1x1x384xf32, #tpu.memory_space<vmem>>, vector<1x1x384xf32>
    %9 = vector.shape_cast %8 : vector<1x1x384xf32> to vector<1x384xf32>
    %10 = vector.broadcast %9 : vector<1x384xf32> to vector<16x384xf32>
    %11 = arith.addf %7, %10 : vector<16x384xf32>
    %12 = vector.extract_strided_slice %11 {offsets = [0, 0], sizes = [8, 384], strides = [1, 1]} : vector<16x384xf32> to vector<8x384xf32>
    %13 = vector.extract_strided_slice %12 {offsets = [0, 0], sizes = [8, 128], strides = [1, 1]} : vector<8x384xf32> to vector<8x128xf32>
    %cst_8 = arith.constant 0.176776692 : f32
    %14 = vector.broadcast %cst_8 : f32 to vector<8x128xf32>
    %15 = arith.mulf %13, %14 : vector<8x128xf32>
    %16 = vector.extract_strided_slice %12 {offsets = [0, 128], sizes = [8, 128], strides = [1, 1]} : vector<8x384xf32> to vector<8x128xf32>
    %17 = vector.extract_strided_slice %12 {offsets = [0, 256], sizes = [8, 128], strides = [1, 1]} : vector<8x384xf32> to vector<8x128xf32>
    %c0_9 = arith.constant 0 : index
    %c0_10 = arith.constant 0 : index
    %c0_11 = arith.constant 0 : index
    %18 = vector.load %arg2[%c0_9, %c0_10, %c0_11] : memref<2x1x8xf32, #tpu.memory_space<vmem>>, vector<1x1x8xf32>
    %19 = vector.shape_cast %18 : vector<1x1x8xf32> to vector<1x8xf32>
    %cst_12 = arith.constant 1.000000e+00 : f32
    %20 = vector.broadcast %cst_12 : f32 to vector<1x8xf32>
    %21 = arith.subf %20, %19 : vector<1x8xf32>
    %cst_13 = arith.constant -1.000000e+09 : f32
    %22 = vector.broadcast %cst_13 : f32 to vector<1x8xf32>
    %23 = arith.mulf %21, %22 : vector<1x8xf32>
    %24 = vector.extract_strided_slice %15 {offsets = [0, 0], sizes = [8, 32], strides = [1, 1]} : vector<8x128xf32> to vector<8x32xf32>
    %25 = vector.extract_strided_slice %16 {offsets = [0, 0], sizes = [8, 32], strides = [1, 1]} : vector<8x128xf32> to vector<8x32xf32>
    %26 = vector.extract_strided_slice %17 {offsets = [0, 0], sizes = [8, 32], strides = [1, 1]} : vector<8x128xf32> to vector<8x32xf32>
    %cst_14 = arith.constant dense<0.000000e+00> : vector<8x8xf32>
    %27 = tpu.matmul %24, %25, %cst_14 {dimension_numbers = #tpu.dot_dimension_numbers<[1], [1], [0], [0], [0, 0, 1, 0], [], []>} : vector<8x32xf32>, vector<8x32xf32>, vector<8x8xf32> -> vector<8x8xf32>
    %28 = vector.broadcast %23 : vector<1x8xf32> to vector<8x8xf32>
    %29 = arith.addf %27, %28 : vector<8x8xf32>
    %cst_15 = arith.constant dense<0xFF800000> : vector<8xf32>
    %30 = vector.multi_reduction <maximumf>, %29, %cst_15 [1] : vector<8x8xf32> to vector<8xf32>
    %31 = vector.shape_cast %30 : vector<8xf32> to vector<8x1xf32>
    %32 = vector.broadcast %31 : vector<8x1xf32> to vector<8x8xf32>
    %33 = arith.subf %29, %32 : vector<8x8xf32>
    %34 = math.exp %33 : vector<8x8xf32>
    %cst_16 = arith.constant dense<0.000000e+00> : vector<8xf32>
    %35 = vector.multi_reduction <add>, %34, %cst_16 [1] : vector<8x8xf32> to vector<8xf32>
    %36 = vector.shape_cast %35 : vector<8xf32> to vector<8x1xf32>
    %37 = tpu.reciprocal %36 {approx = true} : vector<8x1xf32> -> vector<8x1xf32>
    %38 = vector.broadcast %37 : vector<8x1xf32> to vector<8x8xf32>
    %39 = arith.mulf %34, %38 : vector<8x8xf32>
    %cst_17 = arith.constant dense<0.000000e+00> : vector<8x32xf32>
    %40 = tpu.matmul %39, %26, %cst_17 {dimension_numbers = #tpu.dot_dimension_numbers<[1], [0], [0], [1], [0, 0, 1, 1], [], []>} : vector<8x8xf32>, vector<8x32xf32>, vector<8x32xf32> -> vector<8x32xf32>
    %41 = vector.extract_strided_slice %15 {offsets = [0, 32], sizes = [8, 32], strides = [1, 1]} : vector<8x128xf32> to vector<8x32xf32>
    %42 = vector.extract_strided_slice %16 {offsets = [0, 32], sizes = [8, 32], strides = [1, 1]} : vector<8x128xf32> to vector<8x32xf32>
    %43 = vector.extract_strided_slice %17 {offsets = [0, 32], sizes = [8, 32], strides = [1, 1]} : vector<8x128xf32> to vector<8x32xf32>
    %cst_18 = arith.constant dense<0.000000e+00> : vector<8x8xf32>
    %44 = tpu.matmul %41, %42, %cst_18 {dimension_numbers = #tpu.dot_dimension_numbers<[1], [1], [0], [0], [0, 0, 1, 0], [], []>} : vector<8x32xf32>, vector<8x32xf32>, vector<8x8xf32> -> vector<8x8xf32>
    %45 = vector.broadcast %23 : vector<1x8xf32> to vector<8x8xf32>
    %46 = arith.addf %44, %45 : vector<8x8xf32>
    %cst_19 = arith.constant dense<0xFF800000> : vector<8xf32>
    %47 = vector.multi_reduction <maximumf>, %46, %cst_19 [1] : vector<8x8xf32> to vector<8xf32>
    %48 = vector.shape_cast %47 : vector<8xf32> to vector<8x1xf32>
    %49 = vector.broadcast %48 : vector<8x1xf32> to vector<8x8xf32>
    %50 = arith.subf %46, %49 : vector<8x8xf32>
    %51 = math.exp %50 : vector<8x8xf32>
    %cst_20 = arith.constant dense<0.000000e+00> : vector<8xf32>
    %52 = vector.multi_reduction <add>, %51, %cst_20 [1] : vector<8x8xf32> to vector<8xf32>
    %53 = vector.shape_cast %52 : vector<8xf32> to vector<8x1xf32>
    %54 = tpu.reciprocal %53 {approx = true} : vector<8x1xf32> -> vector<8x1xf32>
    %55 = vector.broadcast %54 : vector<8x1xf32> to vector<8x8xf32>
    %56 = arith.mulf %51, %55 : vector<8x8xf32>
    %cst_21 = arith.constant dense<0.000000e+00> : vector<8x32xf32>
    %57 = tpu.matmul %56, %43, %cst_21 {dimension_numbers = #tpu.dot_dimension_numbers<[1], [0], [0], [1], [0, 0, 1, 1], [], []>} : vector<8x8xf32>, vector<8x32xf32>, vector<8x32xf32> -> vector<8x32xf32>
    %58 = vector.extract_strided_slice %15 {offsets = [0, 64], sizes = [8, 32], strides = [1, 1]} : vector<8x128xf32> to vector<8x32xf32>
    %59 = vector.extract_strided_slice %16 {offsets = [0, 64], sizes = [8, 32], strides = [1, 1]} : vector<8x128xf32> to vector<8x32xf32>
    %60 = vector.extract_strided_slice %17 {offsets = [0, 64], sizes = [8, 32], strides = [1, 1]} : vector<8x128xf32> to vector<8x32xf32>
    %cst_22 = arith.constant dense<0.000000e+00> : vector<8x8xf32>
    %61 = tpu.matmul %58, %59, %cst_22 {dimension_numbers = #tpu.dot_dimension_numbers<[1], [1], [0], [0], [0, 0, 1, 0], [], []>} : vector<8x32xf32>, vector<8x32xf32>, vector<8x8xf32> -> vector<8x8xf32>
    %62 = vector.broadcast %23 : vector<1x8xf32> to vector<8x8xf32>
    %63 = arith.addf %61, %62 : vector<8x8xf32>
    %cst_23 = arith.constant dense<0xFF800000> : vector<8xf32>
    %64 = vector.multi_reduction <maximumf>, %63, %cst_23 [1] : vector<8x8xf32> to vector<8xf32>
    %65 = vector.shape_cast %64 : vector<8xf32> to vector<8x1xf32>
    %66 = vector.broadcast %65 : vector<8x1xf32> to vector<8x8xf32>
    %67 = arith.subf %63, %66 : vector<8x8xf32>
    %68 = math.exp %67 : vector<8x8xf32>
    %cst_24 = arith.constant dense<0.000000e+00> : vector<8xf32>
    %69 = vector.multi_reduction <add>, %68, %cst_24 [1] : vector<8x8xf32> to vector<8xf32>
    %70 = vector.shape_cast %69 : vector<8xf32> to vector<8x1xf32>
    %71 = tpu.reciprocal %70 {approx = true} : vector<8x1xf32> -> vector<8x1xf32>
    %72 = vector.broadcast %71 : vector<8x1xf32> to vector<8x8xf32>
    %73 = arith.mulf %68, %72 : vector<8x8xf32>
    %cst_25 = arith.constant dense<0.000000e+00> : vector<8x32xf32>
    %74 = tpu.matmul %73, %60, %cst_25 {dimension_numbers = #tpu.dot_dimension_numbers<[1], [0], [0], [1], [0, 0, 1, 1], [], []>} : vector<8x8xf32>, vector<8x32xf32>, vector<8x32xf32> -> vector<8x32xf32>
    %75 = vector.extract_strided_slice %15 {offsets = [0, 96], sizes = [8, 32], strides = [1, 1]} : vector<8x128xf32> to vector<8x32xf32>
    %76 = vector.extract_strided_slice %16 {offsets = [0, 96], sizes = [8, 32], strides = [1, 1]} : vector<8x128xf32> to vector<8x32xf32>
    %77 = vector.extract_strided_slice %17 {offsets = [0, 96], sizes = [8, 32], strides = [1, 1]} : vector<8x128xf32> to vector<8x32xf32>
    %cst_26 = arith.constant dense<0.000000e+00> : vector<8x8xf32>
    %78 = tpu.matmul %75, %76, %cst_26 {dimension_numbers = #tpu.dot_dimension_numbers<[1], [1], [0], [0], [0, 0, 1, 0], [], []>} : vector<8x32xf32>, vector<8x32xf32>, vector<8x8xf32> -> vector<8x8xf32>
    %79 = vector.broadcast %23 : vector<1x8xf32> to vector<8x8xf32>
    %80 = arith.addf %78, %79 : vector<8x8xf32>
    %cst_27 = arith.constant dense<0xFF800000> : vector<8xf32>
    %81 = vector.multi_reduction <maximumf>, %80, %cst_27 [1] : vector<8x8xf32> to vector<8xf32>
    %82 = vector.shape_cast %81 : vector<8xf32> to vector<8x1xf32>
    %83 = vector.broadcast %82 : vector<8x1xf32> to vector<8x8xf32>
    %84 = arith.subf %80, %83 : vector<8x8xf32>
    %85 = math.exp %84 : vector<8x8xf32>
    %cst_28 = arith.constant dense<0.000000e+00> : vector<8xf32>
    %86 = vector.multi_reduction <add>, %85, %cst_28 [1] : vector<8x8xf32> to vector<8xf32>
    %87 = vector.shape_cast %86 : vector<8xf32> to vector<8x1xf32>
    %88 = tpu.reciprocal %87 {approx = true} : vector<8x1xf32> -> vector<8x1xf32>
    %89 = vector.broadcast %88 : vector<8x1xf32> to vector<8x8xf32>
    %90 = arith.mulf %85, %89 : vector<8x8xf32>
    %cst_29 = arith.constant dense<0.000000e+00> : vector<8x32xf32>
    %91 = tpu.matmul %90, %77, %cst_29 {dimension_numbers = #tpu.dot_dimension_numbers<[1], [0], [0], [1], [0, 0, 1, 1], [], []>} : vector<8x8xf32>, vector<8x32xf32>, vector<8x32xf32> -> vector<8x32xf32>
    %92 = tpu.concatenate %40, %57, %74, %91 in 1 : vector<8x32xf32>, vector<8x32xf32>, vector<8x32xf32>, vector<8x32xf32> -> vector<8x128xf32>
    %93 = vector.extract_strided_slice %11 {offsets = [8, 0], sizes = [8, 384], strides = [1, 1]} : vector<16x384xf32> to vector<8x384xf32>
    %94 = vector.extract_strided_slice %93 {offsets = [0, 0], sizes = [8, 128], strides = [1, 1]} : vector<8x384xf32> to vector<8x128xf32>
    %cst_30 = arith.constant 0.176776692 : f32
    %95 = vector.broadcast %cst_30 : f32 to vector<8x128xf32>
    %96 = arith.mulf %94, %95 : vector<8x128xf32>
    %97 = vector.extract_strided_slice %93 {offsets = [0, 128], sizes = [8, 128], strides = [1, 1]} : vector<8x384xf32> to vector<8x128xf32>
    %98 = vector.extract_strided_slice %93 {offsets = [0, 256], sizes = [8, 128], strides = [1, 1]} : vector<8x384xf32> to vector<8x128xf32>
    %c1 = arith.constant 1 : index
    %c0_31 = arith.constant 0 : index
    %c0_32 = arith.constant 0 : index
    %99 = vector.load %arg2[%c1, %c0_31, %c0_32] : memref<2x1x8xf32, #tpu.memory_space<vmem>>, vector<1x1x8xf32>
    %100 = vector.shape_cast %99 : vector<1x1x8xf32> to vector<1x8xf32>
    %cst_33 = arith.constant 1.000000e+00 : f32
    %101 = vector.broadcast %cst_33 : f32 to vector<1x8xf32>
    %102 = arith.subf %101, %100 : vector<1x8xf32>
    %cst_34 = arith.constant -1.000000e+09 : f32
    %103 = vector.broadcast %cst_34 : f32 to vector<1x8xf32>
    %104 = arith.mulf %102, %103 : vector<1x8xf32>
    %105 = vector.extract_strided_slice %96 {offsets = [0, 0], sizes = [8, 32], strides = [1, 1]} : vector<8x128xf32> to vector<8x32xf32>
    %106 = vector.extract_strided_slice %97 {offsets = [0, 0], sizes = [8, 32], strides = [1, 1]} : vector<8x128xf32> to vector<8x32xf32>
    %107 = vector.extract_strided_slice %98 {offsets = [0, 0], sizes = [8, 32], strides = [1, 1]} : vector<8x128xf32> to vector<8x32xf32>
    %cst_35 = arith.constant dense<0.000000e+00> : vector<8x8xf32>
    %108 = tpu.matmul %105, %106, %cst_35 {dimension_numbers = #tpu.dot_dimension_numbers<[1], [1], [0], [0], [0, 0, 1, 0], [], []>} : vector<8x32xf32>, vector<8x32xf32>, vector<8x8xf32> -> vector<8x8xf32>
    %109 = vector.broadcast %104 : vector<1x8xf32> to vector<8x8xf32>
    %110 = arith.addf %108, %109 : vector<8x8xf32>
    %cst_36 = arith.constant dense<0xFF800000> : vector<8xf32>
    %111 = vector.multi_reduction <maximumf>, %110, %cst_36 [1] : vector<8x8xf32> to vector<8xf32>
    %112 = vector.shape_cast %111 : vector<8xf32> to vector<8x1xf32>
    %113 = vector.broadcast %112 : vector<8x1xf32> to vector<8x8xf32>
    %114 = arith.subf %110, %113 : vector<8x8xf32>
    %115 = math.exp %114 : vector<8x8xf32>
    %cst_37 = arith.constant dense<0.000000e+00> : vector<8xf32>
    %116 = vector.multi_reduction <add>, %115, %cst_37 [1] : vector<8x8xf32> to vector<8xf32>
    %117 = vector.shape_cast %116 : vector<8xf32> to vector<8x1xf32>
    %118 = tpu.reciprocal %117 {approx = true} : vector<8x1xf32> -> vector<8x1xf32>
    %119 = vector.broadcast %118 : vector<8x1xf32> to vector<8x8xf32>
    %120 = arith.mulf %115, %119 : vector<8x8xf32>
    %cst_38 = arith.constant dense<0.000000e+00> : vector<8x32xf32>
    %121 = tpu.matmul %120, %107, %cst_38 {dimension_numbers = #tpu.dot_dimension_numbers<[1], [0], [0], [1], [0, 0, 1, 1], [], []>} : vector<8x8xf32>, vector<8x32xf32>, vector<8x32xf32> -> vector<8x32xf32>
    %122 = vector.extract_strided_slice %96 {offsets = [0, 32], sizes = [8, 32], strides = [1, 1]} : vector<8x128xf32> to vector<8x32xf32>
    %123 = vector.extract_strided_slice %97 {offsets = [0, 32], sizes = [8, 32], strides = [1, 1]} : vector<8x128xf32> to vector<8x32xf32>
    %124 = vector.extract_strided_slice %98 {offsets = [0, 32], sizes = [8, 32], strides = [1, 1]} : vector<8x128xf32> to vector<8x32xf32>
    %cst_39 = arith.constant dense<0.000000e+00> : vector<8x8xf32>
    %125 = tpu.matmul %122, %123, %cst_39 {dimension_numbers = #tpu.dot_dimension_numbers<[1], [1], [0], [0], [0, 0, 1, 0], [], []>} : vector<8x32xf32>, vector<8x32xf32>, vector<8x8xf32> -> vector<8x8xf32>
    %126 = vector.broadcast %104 : vector<1x8xf32> to vector<8x8xf32>
    %127 = arith.addf %125, %126 : vector<8x8xf32>
    %cst_40 = arith.constant dense<0xFF800000> : vector<8xf32>
    %128 = vector.multi_reduction <maximumf>, %127, %cst_40 [1] : vector<8x8xf32> to vector<8xf32>
    %129 = vector.shape_cast %128 : vector<8xf32> to vector<8x1xf32>
    %130 = vector.broadcast %129 : vector<8x1xf32> to vector<8x8xf32>
    %131 = arith.subf %127, %130 : vector<8x8xf32>
    %132 = math.exp %131 : vector<8x8xf32>
    %cst_41 = arith.constant dense<0.000000e+00> : vector<8xf32>
    %133 = vector.multi_reduction <add>, %132, %cst_41 [1] : vector<8x8xf32> to vector<8xf32>
    %134 = vector.shape_cast %133 : vector<8xf32> to vector<8x1xf32>
    %135 = tpu.reciprocal %134 {approx = true} : vector<8x1xf32> -> vector<8x1xf32>
    %136 = vector.broadcast %135 : vector<8x1xf32> to vector<8x8xf32>
    %137 = arith.mulf %132, %136 : vector<8x8xf32>
    %cst_42 = arith.constant dense<0.000000e+00> : vector<8x32xf32>
    %138 = tpu.matmul %137, %124, %cst_42 {dimension_numbers = #tpu.dot_dimension_numbers<[1], [0], [0], [1], [0, 0, 1, 1], [], []>} : vector<8x8xf32>, vector<8x32xf32>, vector<8x32xf32> -> vector<8x32xf32>
    %139 = vector.extract_strided_slice %96 {offsets = [0, 64], sizes = [8, 32], strides = [1, 1]} : vector<8x128xf32> to vector<8x32xf32>
    %140 = vector.extract_strided_slice %97 {offsets = [0, 64], sizes = [8, 32], strides = [1, 1]} : vector<8x128xf32> to vector<8x32xf32>
    %141 = vector.extract_strided_slice %98 {offsets = [0, 64], sizes = [8, 32], strides = [1, 1]} : vector<8x128xf32> to vector<8x32xf32>
    %cst_43 = arith.constant dense<0.000000e+00> : vector<8x8xf32>
    %142 = tpu.matmul %139, %140, %cst_43 {dimension_numbers = #tpu.dot_dimension_numbers<[1], [1], [0], [0], [0, 0, 1, 0], [], []>} : vector<8x32xf32>, vector<8x32xf32>, vector<8x8xf32> -> vector<8x8xf32>
    %143 = vector.broadcast %104 : vector<1x8xf32> to vector<8x8xf32>
    %144 = arith.addf %142, %143 : vector<8x8xf32>
    %cst_44 = arith.constant dense<0xFF800000> : vector<8xf32>
    %145 = vector.multi_reduction <maximumf>, %144, %cst_44 [1] : vector<8x8xf32> to vector<8xf32>
    %146 = vector.shape_cast %145 : vector<8xf32> to vector<8x1xf32>
    %147 = vector.broadcast %146 : vector<8x1xf32> to vector<8x8xf32>
    %148 = arith.subf %144, %147 : vector<8x8xf32>
    %149 = math.exp %148 : vector<8x8xf32>
    %cst_45 = arith.constant dense<0.000000e+00> : vector<8xf32>
    %150 = vector.multi_reduction <add>, %149, %cst_45 [1] : vector<8x8xf32> to vector<8xf32>
    %151 = vector.shape_cast %150 : vector<8xf32> to vector<8x1xf32>
    %152 = tpu.reciprocal %151 {approx = true} : vector<8x1xf32> -> vector<8x1xf32>
    %153 = vector.broadcast %152 : vector<8x1xf32> to vector<8x8xf32>
    %154 = arith.mulf %149, %153 : vector<8x8xf32>
    %cst_46 = arith.constant dense<0.000000e+00> : vector<8x32xf32>
    %155 = tpu.matmul %154, %141, %cst_46 {dimension_numbers = #tpu.dot_dimension_numbers<[1], [0], [0], [1], [0, 0, 1, 1], [], []>} : vector<8x8xf32>, vector<8x32xf32>, vector<8x32xf32> -> vector<8x32xf32>
    %156 = vector.extract_strided_slice %96 {offsets = [0, 96], sizes = [8, 32], strides = [1, 1]} : vector<8x128xf32> to vector<8x32xf32>
    %157 = vector.extract_strided_slice %97 {offsets = [0, 96], sizes = [8, 32], strides = [1, 1]} : vector<8x128xf32> to vector<8x32xf32>
    %158 = vector.extract_strided_slice %98 {offsets = [0, 96], sizes = [8, 32], strides = [1, 1]} : vector<8x128xf32> to vector<8x32xf32>
    %cst_47 = arith.constant dense<0.000000e+00> : vector<8x8xf32>
    %159 = tpu.matmul %156, %157, %cst_47 {dimension_numbers = #tpu.dot_dimension_numbers<[1], [1], [0], [0], [0, 0, 1, 0], [], []>} : vector<8x32xf32>, vector<8x32xf32>, vector<8x8xf32> -> vector<8x8xf32>
    %160 = vector.broadcast %104 : vector<1x8xf32> to vector<8x8xf32>
    %161 = arith.addf %159, %160 : vector<8x8xf32>
    %cst_48 = arith.constant dense<0xFF800000> : vector<8xf32>
    %162 = vector.multi_reduction <maximumf>, %161, %cst_48 [1] : vector<8x8xf32> to vector<8xf32>
    %163 = vector.shape_cast %162 : vector<8xf32> to vector<8x1xf32>
    %164 = vector.broadcast %163 : vector<8x1xf32> to vector<8x8xf32>
    %165 = arith.subf %161, %164 : vector<8x8xf32>
    %166 = math.exp %165 : vector<8x8xf32>
    %cst_49 = arith.constant dense<0.000000e+00> : vector<8xf32>
    %167 = vector.multi_reduction <add>, %166, %cst_49 [1] : vector<8x8xf32> to vector<8xf32>
    %168 = vector.shape_cast %167 : vector<8xf32> to vector<8x1xf32>
    %169 = tpu.reciprocal %168 {approx = true} : vector<8x1xf32> -> vector<8x1xf32>
    %170 = vector.broadcast %169 : vector<8x1xf32> to vector<8x8xf32>
    %171 = arith.mulf %166, %170 : vector<8x8xf32>
    %cst_50 = arith.constant dense<0.000000e+00> : vector<8x32xf32>
    %172 = tpu.matmul %171, %158, %cst_50 {dimension_numbers = #tpu.dot_dimension_numbers<[1], [0], [0], [1], [0, 0, 1, 1], [], []>} : vector<8x8xf32>, vector<8x32xf32>, vector<8x32xf32> -> vector<8x32xf32>
    %173 = tpu.concatenate %121, %138, %155, %172 in 1 : vector<8x32xf32>, vector<8x32xf32>, vector<8x32xf32>, vector<8x32xf32> -> vector<8x128xf32>
    %174 = tpu.concatenate %92, %173 in 0 : vector<8x128xf32>, vector<8x128xf32> -> vector<16x128xf32>
    %175 = arith.truncf %174 : vector<16x128xf32> to vector<16x128xbf16>
    %c0_51 = arith.constant 0 : index
    %c0_52 = arith.constant 0 : index
    %c0_53 = arith.constant 0 : index
    %176 = vector.load %arg7[%c0_51, %c0_52, %c0_53] : memref<1x128x128xbf16, #tpu.memory_space<vmem>>, vector<1x128x128xbf16>
    %177 = vector.shape_cast %176 : vector<1x128x128xbf16> to vector<128x128xbf16>
    %cst_54 = arith.constant dense<0.000000e+00> : vector<16x128xf32>
    %178 = tpu.matmul %175, %177, %cst_54 {dimension_numbers = #tpu.dot_dimension_numbers<[1], [0], [0], [1], [0, 0, 1, 1], [], []>} : vector<16x128xbf16>, vector<128x128xbf16>, vector<16x128xf32> -> vector<16x128xf32>
    %c0_55 = arith.constant 0 : index
    %c0_56 = arith.constant 0 : index
    %c0_57 = arith.constant 0 : index
    %179 = vector.load %arg8[%c0_55, %c0_56, %c0_57] : memref<1x1x128xf32, #tpu.memory_space<vmem>>, vector<1x1x128xf32>
    %180 = vector.shape_cast %179 : vector<1x1x128xf32> to vector<1x128xf32>
    %181 = vector.broadcast %180 : vector<1x128xf32> to vector<16x128xf32>
    %182 = arith.addf %178, %181 : vector<16x128xf32>
    %183 = arith.addf %3, %182 : vector<16x128xf32>
    %c0_58 = arith.constant 0 : index
    %c0_59 = arith.constant 0 : index
    %c0_60 = arith.constant 0 : index
    %184 = vector.load %arg9[%c0_58, %c0_59, %c0_60] : memref<1x1x128xf32, #tpu.memory_space<vmem>>, vector<1x1x128xf32>
    %185 = vector.shape_cast %184 : vector<1x1x128xf32> to vector<1x128xf32>
    %c0_61 = arith.constant 0 : index
    %c0_62 = arith.constant 0 : index
    %c0_63 = arith.constant 0 : index
    %186 = vector.load %arg10[%c0_61, %c0_62, %c0_63] : memref<1x1x128xf32, #tpu.memory_space<vmem>>, vector<1x1x128xf32>
    %187 = vector.shape_cast %186 : vector<1x1x128xf32> to vector<1x128xf32>
    %cst_64 = arith.constant dense<0.000000e+00> : vector<16xf32>
    %188 = vector.multi_reduction <add>, %183, %cst_64 [1] : vector<16x128xf32> to vector<16xf32>
    %189 = vector.shape_cast %188 : vector<16xf32> to vector<16x1xf32>
    %cst_65 = arith.constant 1.280000e+02 : f32
    %190 = vector.broadcast %cst_65 : f32 to vector<16x1xf32>
    %191 = arith.divf %189, %190 : vector<16x1xf32>
    %192 = vector.broadcast %191 : vector<16x1xf32> to vector<16x128xf32>
    %193 = arith.subf %183, %192 : vector<16x128xf32>
    %194 = arith.mulf %193, %193 : vector<16x128xf32>
    %cst_66 = arith.constant dense<0.000000e+00> : vector<16xf32>
    %195 = vector.multi_reduction <add>, %194, %cst_66 [1] : vector<16x128xf32> to vector<16xf32>
    %196 = vector.shape_cast %195 : vector<16xf32> to vector<16x1xf32>
    %cst_67 = arith.constant 1.280000e+02 : f32
    %197 = vector.broadcast %cst_67 : f32 to vector<16x1xf32>
    %198 = arith.divf %196, %197 : vector<16x1xf32>
    %cst_68 = arith.constant 9.99999996E-13 : f32
    %199 = vector.broadcast %cst_68 : f32 to vector<16x1xf32>
    %200 = arith.addf %198, %199 : vector<16x1xf32>
    %201 = math.rsqrt %200 : vector<16x1xf32>
    %202 = vector.broadcast %201 : vector<16x1xf32> to vector<16x128xf32>
    %203 = arith.mulf %193, %202 : vector<16x128xf32>
    %204 = vector.broadcast %185 : vector<1x128xf32> to vector<16x128xf32>
    %205 = arith.mulf %203, %204 : vector<16x128xf32>
    %206 = vector.broadcast %187 : vector<1x128xf32> to vector<16x128xf32>
    %207 = arith.addf %205, %206 : vector<16x128xf32>
    %208 = arith.truncf %207 : vector<16x128xf32> to vector<16x128xbf16>
    %c0_69 = arith.constant 0 : index
    %c0_70 = arith.constant 0 : index
    %c0_71 = arith.constant 0 : index
    %209 = vector.load %arg11[%c0_69, %c0_70, %c0_71] : memref<1x128x256xbf16, #tpu.memory_space<vmem>>, vector<1x128x256xbf16>
    %210 = vector.shape_cast %209 : vector<1x128x256xbf16> to vector<128x256xbf16>
    %cst_72 = arith.constant dense<0.000000e+00> : vector<16x256xf32>
    %211 = tpu.matmul %208, %210, %cst_72 {dimension_numbers = #tpu.dot_dimension_numbers<[1], [0], [0], [1], [0, 0, 1, 1], [], []>} : vector<16x128xbf16>, vector<128x256xbf16>, vector<16x256xf32> -> vector<16x256xf32>
    %c0_73 = arith.constant 0 : index
    %c0_74 = arith.constant 0 : index
    %c0_75 = arith.constant 0 : index
    %212 = vector.load %arg12[%c0_73, %c0_74, %c0_75] : memref<1x1x256xf32, #tpu.memory_space<vmem>>, vector<1x1x256xf32>
    %213 = vector.shape_cast %212 : vector<1x1x256xf32> to vector<1x256xf32>
    %214 = vector.broadcast %213 : vector<1x256xf32> to vector<16x256xf32>
    %215 = arith.addf %211, %214 : vector<16x256xf32>
    %cst_76 = arith.constant 5.000000e-01 : f32
    %216 = vector.broadcast %cst_76 : f32 to vector<16x256xf32>
    %217 = arith.mulf %216, %215 : vector<16x256xf32>
    %cst_77 = arith.constant 4.471500e-02 : f32
    %218 = vector.broadcast %cst_77 : f32 to vector<16x256xf32>
    %219 = arith.mulf %218, %215 : vector<16x256xf32>
    %220 = arith.mulf %219, %215 : vector<16x256xf32>
    %221 = arith.mulf %220, %215 : vector<16x256xf32>
    %222 = arith.addf %215, %221 : vector<16x256xf32>
    %cst_78 = arith.constant 0.797884583 : f32
    %223 = vector.broadcast %cst_78 : f32 to vector<16x256xf32>
    %224 = arith.mulf %223, %222 : vector<16x256xf32>
    %225 = math.tanh %224 : vector<16x256xf32>
    %cst_79 = arith.constant 1.000000e+00 : f32
    %226 = vector.broadcast %cst_79 : f32 to vector<16x256xf32>
    %227 = arith.addf %226, %225 : vector<16x256xf32>
    %228 = arith.mulf %217, %227 : vector<16x256xf32>
    %229 = arith.truncf %228 : vector<16x256xf32> to vector<16x256xbf16>
    %c0_80 = arith.constant 0 : index
    %c0_81 = arith.constant 0 : index
    %c0_82 = arith.constant 0 : index
    %230 = vector.load %arg13[%c0_80, %c0_81, %c0_82] : memref<1x256x128xbf16, #tpu.memory_space<vmem>>, vector<1x256x128xbf16>
    %231 = vector.shape_cast %230 : vector<1x256x128xbf16> to vector<256x128xbf16>
    %cst_83 = arith.constant dense<0.000000e+00> : vector<16x128xf32>
    %232 = tpu.matmul %229, %231, %cst_83 {dimension_numbers = #tpu.dot_dimension_numbers<[1], [0], [0], [1], [0, 0, 1, 1], [], []>} : vector<16x256xbf16>, vector<256x128xbf16>, vector<16x128xf32> -> vector<16x128xf32>
    %c0_84 = arith.constant 0 : index
    %c0_85 = arith.constant 0 : index
    %c0_86 = arith.constant 0 : index
    %233 = vector.load %arg14[%c0_84, %c0_85, %c0_86] : memref<1x1x128xf32, #tpu.memory_space<vmem>>, vector<1x1x128xf32>
    %234 = vector.shape_cast %233 : vector<1x1x128xf32> to vector<1x128xf32>
    %235 = vector.broadcast %234 : vector<1x128xf32> to vector<16x128xf32>
    %236 = arith.addf %232, %235 : vector<16x128xf32>
    %237 = arith.addf %207, %236 : vector<16x128xf32>
    %c0_87 = arith.constant 0 : index
    %c0_88 = arith.constant 0 : index
    %c0_89 = arith.constant 0 : index
    %238 = vector.load %arg15[%c0_87, %c0_88, %c0_89] : memref<1x1x128xf32, #tpu.memory_space<vmem>>, vector<1x1x128xf32>
    %239 = vector.shape_cast %238 : vector<1x1x128xf32> to vector<1x128xf32>
    %c0_90 = arith.constant 0 : index
    %c0_91 = arith.constant 0 : index
    %c0_92 = arith.constant 0 : index
    %240 = vector.load %arg16[%c0_90, %c0_91, %c0_92] : memref<1x1x128xf32, #tpu.memory_space<vmem>>, vector<1x1x128xf32>
    %241 = vector.shape_cast %240 : vector<1x1x128xf32> to vector<1x128xf32>
    %cst_93 = arith.constant dense<0.000000e+00> : vector<16xf32>
    %242 = vector.multi_reduction <add>, %237, %cst_93 [1] : vector<16x128xf32> to vector<16xf32>
    %243 = vector.shape_cast %242 : vector<16xf32> to vector<16x1xf32>
    %cst_94 = arith.constant 1.280000e+02 : f32
    %244 = vector.broadcast %cst_94 : f32 to vector<16x1xf32>
    %245 = arith.divf %243, %244 : vector<16x1xf32>
    %246 = vector.broadcast %245 : vector<16x1xf32> to vector<16x128xf32>
    %247 = arith.subf %237, %246 : vector<16x128xf32>
    %248 = arith.mulf %247, %247 : vector<16x128xf32>
    %cst_95 = arith.constant dense<0.000000e+00> : vector<16xf32>
    %249 = vector.multi_reduction <add>, %248, %cst_95 [1] : vector<16x128xf32> to vector<16xf32>
    %250 = vector.shape_cast %249 : vector<16xf32> to vector<16x1xf32>
    %cst_96 = arith.constant 1.280000e+02 : f32
    %251 = vector.broadcast %cst_96 : f32 to vector<16x1xf32>
    %252 = arith.divf %250, %251 : vector<16x1xf32>
    %cst_97 = arith.constant 9.99999996E-13 : f32
    %253 = vector.broadcast %cst_97 : f32 to vector<16x1xf32>
    %254 = arith.addf %252, %253 : vector<16x1xf32>
    %255 = math.rsqrt %254 : vector<16x1xf32>
    %256 = vector.broadcast %255 : vector<16x1xf32> to vector<16x128xf32>
    %257 = arith.mulf %247, %256 : vector<16x128xf32>
    %258 = vector.broadcast %239 : vector<1x128xf32> to vector<16x128xf32>
    %259 = arith.mulf %257, %258 : vector<16x128xf32>
    %260 = vector.broadcast %241 : vector<1x128xf32> to vector<16x128xf32>
    %261 = arith.addf %259, %260 : vector<16x128xf32>
    %c0_98 = arith.constant 0 : index
    %c0_99 = arith.constant 0 : index
    %262 = vector.load %arg22[%c0_98, %c0_99] : memref<16x128xf32, #tpu.memory_space<vmem>>, vector<16x128xf32>
    tpu.vector_store %arg22[%c0_98, %c0_99], %261 {strides = array<i32>} : memref<16x128xf32, #tpu.memory_space<vmem>>, vector<16x128xf32>,
    %c1_i32 = arith.constant 1 : i32
    %263 = arith.cmpi eq, %arg0, %c1_i32 : i32
    %264 = arith.extui %263 : i1 to i32
    %c0_i32_100 = arith.constant 0 : i32
    %265 = arith.cmpi ne, %264, %c0_i32_100 : i32
    scf.if %265 {
      %266 = vector.extract_strided_slice %261 {offsets = [0, 0], sizes = [1, 128], strides = [1, 1]} : vector<16x128xf32> to vector<1x128xf32>
      %267 = vector.extract_strided_slice %261 {offsets = [8, 0], sizes = [1, 128], strides = [1, 1]} : vector<16x128xf32> to vector<1x128xf32>
      %268 = tpu.concatenate %266, %267 in 0 : vector<1x128xf32>, vector<1x128xf32> -> vector<2x128xf32>
      %269 = arith.truncf %268 : vector<2x128xf32> to vector<2x128xbf16>
      %c0_101 = arith.constant 0 : index
      %c0_102 = arith.constant 0 : index
      %270 = vector.load %arg17[%c0_101, %c0_102] : memref<128x128xbf16, #tpu.memory_space<vmem>>, vector<128x128xbf16>
      %cst_103 = arith.constant dense<0.000000e+00> : vector<2x128xf32>
      %271 = tpu.matmul %269, %270, %cst_103 {dimension_numbers = #tpu.dot_dimension_numbers<[1], [0], [0], [1], [0, 0, 1, 1], [], []>} : vector<2x128xbf16>, vector<128x128xbf16>, vector<2x128xf32> -> vector<2x128xf32>
      %c0_104 = arith.constant 0 : index
      %c0_105 = arith.constant 0 : index
      %272 = vector.load %arg18[%c0_104, %c0_105] : memref<1x128xf32, #tpu.memory_space<vmem>>, vector<1x128xf32>
      %273 = vector.broadcast %272 : vector<1x128xf32> to vector<2x128xf32>
      %274 = arith.addf %271, %273 : vector<2x128xf32>
      %275 = math.tanh %274 : vector<2x128xf32>
      %276 = arith.truncf %275 : vector<2x128xf32> to vector<2x128xbf16>
      %c0_106 = arith.constant 0 : index
      %c0_107 = arith.constant 0 : index
      %277 = vector.load %arg19[%c0_106, %c0_107] : memref<128x128xbf16, #tpu.memory_space<vmem>>, vector<128x128xbf16>
      %cst_108 = arith.constant dense<0.000000e+00> : vector<2x128xf32>
      %278 = tpu.matmul %276, %277, %cst_108 {dimension_numbers = #tpu.dot_dimension_numbers<[1], [0], [0], [1], [0, 0, 1, 1], [], []>} : vector<2x128xbf16>, vector<128x128xbf16>, vector<2x128xf32> -> vector<2x128xf32>
      %c0_109 = arith.constant 0 : index
      %c0_110 = arith.constant 0 : index
      %279 = vector.load %arg20[%c0_109, %c0_110] : memref<1x128xf32, #tpu.memory_space<vmem>>, vector<1x128xf32>
      %280 = vector.broadcast %279 : vector<1x128xf32> to vector<2x128xf32>
      %281 = arith.addf %278, %280 : vector<2x128xf32>
      %c0_111 = arith.constant 0 : index
      %c0_112 = arith.constant 0 : index
      %282 = vector.load %arg21[%c0_111, %c0_112] : memref<2x128xf32, #tpu.memory_space<vmem>>, vector<2x128xf32>
      tpu.vector_store %arg21[%c0_111, %c0_112], %281 {strides = array<i32>} : memref<2x128xf32, #tpu.memory_space<vmem>>, vector<2x128xf32>,
    } else {
    }
    return
  }
  func.func @transform_0(%arg0: i32) -> (i32, i32) {
    %c0_i32 = arith.constant 0 : i32
    %c0_i32_0 = arith.constant 0 : i32
    %c0_i32_1 = arith.constant 0 : i32
    return %c0_i32, %c0_i32_0 : i32, i32
  }
  func.func @transform_1(%arg0: i32) -> (i32, i32, i32) {
    %c0_i32 = arith.constant 0 : i32
    %c0_i32_0 = arith.constant 0 : i32
    %c0_i32_1 = arith.constant 0 : i32
    %c0_i32_2 = arith.constant 0 : i32
    return %c0_i32, %c0_i32_0, %c0_i32_1 : i32, i32, i32
  }
  func.func @transform_2(%arg0: i32) -> (i32, i32) {
    %c0_i32 = arith.constant 0 : i32
    %c0_i32_0 = arith.constant 0 : i32
    %c0_i32_1 = arith.constant 0 : i32
    return %c0_i32, %c0_i32_0 : i32, i32
  }
  func.func @transform_3(%arg0: i32) -> (i32, i32) {
    %c0_i32 = arith.constant 0 : i32
    %c0_i32_0 = arith.constant 0 : i32
    %c0_i32_1 = arith.constant 0 : i32
    return %c0_i32, %c0_i32_0 : i32, i32
  }
  func.func @transform_4(%arg0: i32) -> (i32, i32, i32) {
    %c0_i32 = arith.constant 0 : i32
    %c0_i32_0 = arith.constant 0 : i32
    %c0_i32_1 = arith.constant 0 : i32
    return %arg0, %c0_i32, %c0_i32_0 : i32, i32, i32
  }
  func.func @transform_5(%arg0: i32) -> (i32, i32, i32) {
    %c0_i32 = arith.constant 0 : i32
    %c0_i32_0 = arith.constant 0 : i32
    %c0_i32_1 = arith.constant 0 : i32
    return %arg0, %c0_i32, %c0_i32_0 : i32, i32, i32
  }
  func.func @transform_6(%arg0: i32) -> (i32, i32, i32) {
    %c0_i32 = arith.constant 0 : i32
    %c0_i32_0 = arith.constant 0 : i32
    %c0_i32_1 = arith.constant 0 : i32
    return %arg0, %c0_i32, %c0_i32_0 : i32, i32, i32
  }
  func.func @transform_7(%arg0: i32) -> (i32, i32, i32) {
    %c0_i32 = arith.constant 0 : i32
    %c0_i32_0 = arith.constant 0 : i32
    %c0_i32_1 = arith.constant 0 : i32
    return %arg0, %c0_i32, %c0_i32_0 : i32, i32, i32
  }
  func.func @transform_8(%arg0: i32) -> (i32, i32, i32) {
    %c0_i32 = arith.constant 0 : i32
    %c0_i32_0 = arith.constant 0 : i32
    %c0_i32_1 = arith.constant 0 : i32
    return %arg0, %c0_i32, %c0_i32_0 : i32, i32, i32
  }
  func.func @transform_9(%arg0: i32) -> (i32, i32, i32) {
    %c0_i32 = arith.constant 0 : i32
    %c0_i32_0 = arith.constant 0 : i32
    %c0_i32_1 = arith.constant 0 : i32
    return %arg0, %c0_i32, %c0_i32_0 : i32, i32, i32
  }
  func.func @transform_10(%arg0: i32) -> (i32, i32, i32) {
    %c0_i32 = arith.constant 0 : i32
    %c0_i32_0 = arith.constant 0 : i32
    %c0_i32_1 = arith.constant 0 : i32
    return %arg0, %c0_i32, %c0_i32_0 : i32, i32, i32
  }
  func.func @transform_11(%arg0: i32) -> (i32, i32, i32) {
    %c0_i32 = arith.constant 0 : i32
    %c0_i32_0 = arith.constant 0 : i32
    %c0_i32_1 = arith.constant 0 : i32
    return %arg0, %c0_i32, %c0_i32_0 : i32, i32, i32
  }
  func.func @transform_12(%arg0: i32) -> (i32, i32, i32) {
    %c0_i32 = arith.constant 0 : i32
    %c0_i32_0 = arith.constant 0 : i32
    %c0_i32_1 = arith.constant 0 : i32
    return %arg0, %c0_i32, %c0_i32_0 : i32, i32, i32
  }
  func.func @transform_13(%arg0: i32) -> (i32, i32, i32) {
    %c0_i32 = arith.constant 0 : i32
    %c0_i32_0 = arith.constant 0 : i32
    %c0_i32_1 = arith.constant 0 : i32
    return %arg0, %c0_i32, %c0_i32_0 : i32, i32, i32
  }
  func.func @transform_14(%arg0: i32) -> (i32, i32, i32) {
    %c0_i32 = arith.constant 0 : i32
    %c0_i32_0 = arith.constant 0 : i32
    %c0_i32_1 = arith.constant 0 : i32
    return %arg0, %c0_i32, %c0_i32_0 : i32, i32, i32
  }
  func.func @transform_15(%arg0: i32) -> (i32, i32, i32) {
    %c0_i32 = arith.constant 0 : i32
    %c0_i32_0 = arith.constant 0 : i32
    %c0_i32_1 = arith.constant 0 : i32
    return %arg0, %c0_i32, %c0_i32_0 : i32, i32, i32
  }
  func.func @transform_16(%arg0: i32) -> (i32, i32) {
    %c0_i32 = arith.constant 0 : i32
    %c0_i32_0 = arith.constant 0 : i32
    %c0_i32_1 = arith.constant 0 : i32
    return %c0_i32, %c0_i32_0 : i32, i32
  }
  func.func @transform_17(%arg0: i32) -> (i32, i32) {
    %c0_i32 = arith.constant 0 : i32
    %c0_i32_0 = arith.constant 0 : i32
    %c0_i32_1 = arith.constant 0 : i32
    return %c0_i32, %c0_i32_0 : i32, i32
  }
  func.func @transform_18(%arg0: i32) -> (i32, i32) {
    %c0_i32 = arith.constant 0 : i32
    %c0_i32_0 = arith.constant 0 : i32
    %c0_i32_1 = arith.constant 0 : i32
    return %c0_i32, %c0_i32_0 : i32, i32
  }
  func.func @transform_19(%arg0: i32) -> (i32, i32) {
    %c0_i32 = arith.constant 0 : i32
    %c0_i32_0 = arith.constant 0 : i32
    %c0_i32_1 = arith.constant 0 : i32
    return %c0_i32, %c0_i32_0 : i32, i32
  }
  func.func @transform_20(%arg0: i32) -> (i32, i32) {
    %c0_i32 = arith.constant 0 : i32
    %c0_i32_0 = arith.constant 0 : i32
    %c0_i32_1 = arith.constant 0 : i32
    return %c0_i32, %c0_i32_0 : i32, i32
  }
}

</mosaic_0001>

<bundles_post_ra>
// kernel: distilbert_forward.1
= control target key start
LH: loop header
LB: loop body
LE: loop exit
PB: predicated region body
PF: predicated region fallthrough
CT: control target
= control target key end

     0   :  { %s4346_s0 = inlined_call_operand.vmem [shape: f32[16,128], index: 0, kind: input, shape index: {}]   ;;  %s4347_s1 = inlined_call_operand.vmem [shape: f32[2,1,8], index: 1, kind: input, shape index: {}]   ;;  %s4348_s2 = inlined_call_operand.vmem [shape: f32[1,128], index: 2, kind: input, shape index: {}]   ;;  %s4349_s3 = inlined_call_operand.hbm [shape: f32[1,128], index: 3, kind: input, shape index: {}]   ;;  %s4350_s4 = inlined_call_operand.hbm [shape: bf16[2,128,384], index: 4, kind: input, shape index: {}]   ;;  %s4351_s5 = inlined_call_operand.vmem [shape: f32[2,1,384], index: 5, kind: input, shape index: {}]   ;;  %s4352_s6 = inlined_call_operand.vmem [shape: bf16[2,128,128], index: 6, kind: input, shape index: {}]   ;;  %s4353_s7 = inlined_call_operand.vmem [shape: f32[2,1,128], index: 7, kind: input, shape index: {}]   ;;  %s4354_s8 = inlined_call_operand.vmem [shape: f32[2,1,128], index: 8, kind: input, shape index: {}]   ;;  %s4355_s9 = inlined_call_operand.vmem [shape: f32[2,1,128], index: 9, kind: input, shape index: {}]   ;;  %s4356_s10 = inlined_call_operand.hbm [shape: bf16[2,128,256], index: 10, kind: input, shape index: {}]   ;;  %s4357_s11 = inlined_call_operand.vmem [shape: f32[2,1,256], index: 11, kind: input, shape index: {}]   ;;  %s4358_s12 = inlined_call_operand.hbm [shape: bf16[2,256,128], index: 12, kind: input, shape index: {}]   ;;  %s4359_s13 = inlined_call_operand.vmem [shape: f32[2,1,128], index: 13, kind: input, shape index: {}]   ;;  %s4360_s14 = inlined_call_operand.hbm [shape: f32[2,1,128], index: 14, kind: input, shape index: {}]   ;;  %s4361_s15 = inlined_call_operand.hbm [shape: f32[2,1,128], index: 15, kind: input, shape index: {}]   ;;  %s4362_s16 = inlined_call_operand.vmem [shape: bf16[128,128], index: 16, kind: input, shape index: {}]   ;;  %s4363_s17 = inlined_call_operand.vmem [shape: f32[1,128], index: 17, kind: input, shape index: {}]   ;;  %s4364_s18 = inlined_call_operand.hbm [shape: bf16[128,128], index: 18, kind: input, shape index: {}]   ;;  %s4365_s19 = inlined_call_operand.vmem [shape: f32[1,128], index: 19, kind: input, shape index: {}]   ;;  %s4366_s20 = inlined_call_operand.hbm [shape: f32[2,128], index: 20, kind: output, shape index: {}]  }
   0x1   :  { %4379 = sst [smem:[#allocation26_spill]] %s4346_s0 }
   0x2   :  { %4380 = sst [smem:[#allocation27_spill]] %s4347_s1 }
   0x3   :  { %4381 = sst [smem:[#allocation28_spill]] %s4348_s2 }
   0x4   :  { %4382 = sst [smem:[#allocation29_spill]] %s4349_s3 }
   0x5   :  { %4383 = sst [smem:[#allocation30_spill]] %s4350_s4 }
   0x6   :  { %4384 = sst [smem:[#allocation31_spill]] %s4351_s5 }
   0x7   :  { %4385 = sst [smem:[#allocation32_spill]] %s4352_s6 }
   0x8   :  { %4386 = sst [smem:[#allocation33_spill]] %s4353_s7 }
   0x9   :  { %4387 = sst [smem:[#allocation34_spill]] %s4354_s8 }
   0xa   :  { %4388 = sst [smem:[#allocation35_spill]] %s4355_s9 }
   0xb   :  { %4389 = sst [smem:[#allocation36_spill]] %s4356_s10 }
   0xc   :  { %4390 = sst [smem:[#allocation37_spill]] %s4357_s11 }
   0xd   :  { %4391 = sst [smem:[#allocation38_spill]] %s4358_s12 }
   0xe   :  { %4392 = sst [smem:[#allocation39_spill]] %s4359_s13 }
   0xf   :  { %4393 = sst [smem:[#allocation40_spill]] %s4360_s14 }
  0x10   :  { %4394 = sst [smem:[#allocation41_spill]] %s4362_s16 }
  0x11   :  { %4395 = sst [smem:[#allocation42_spill]] %s4363_s17 }
  0x12   :  { %4396 = sst [smem:[#allocation43_spill]] %s4364_s18 }
  0x13   :  { %4397 = sst [smem:[#allocation44_spill]] %s4365_s19 }
  0x14   :  { %4398 = sst [smem:[#allocation45_spill]] %s4366_s20 }
  0x15   :  { %25 = vsyncpa [#allocation4], 0 }
  0x16   :  { %26 = vsyncpa [#allocation7], 0 }
  0x17   :  { %28 = vsyncpa [#allocation7 + $0x1], 0 }
  0x18   :  { %29 = vsyncpa [#allocation10], 0 }
  0x19   :  { %31 = vsyncpa [#allocation10 + $0x1], 0 }
  0x1a   :  { %32 = vsyncpa [#allocation13], 0 }
  0x1b   :  { %34 = vsyncpa [#allocation13 + $0x1], 0 }
  0x1c   :  { %35 = vsyncpa [#allocation5], 0  ;;  %s3754_s1 = smov 0   ;;  %s3756_s22 = smov 0  }
  0x1d   :  { %s3758_s23 = smov 0   ;;  %s3760_s24 = smov 0  }
  0x1e LB: > { %4399 = sst [smem:[#allocation22_spill]] %s3629_s23  ;;  %s3773_s2 = sadd.s32 4294967295, %s3633_s24   ;;  %s3633_s24 = sphi %s3760_s24, %s4439_s24   ;;  %s3629_s23 = sphi %s3758_s23, %s4441_s23   ;;  %s3625_s22 = sphi %s3756_s22, %s4443_s22   ;;  %s3621_s1 = sphi %s3754_s1, %s4442_s1  }
  0x1f   : > { %p145_p0 = scmp.ne.s32.totalorder %s3625_s22, %s3621_s1  ;;  %p146_p1 = scmp.eq.s32.totalorder %s3773_s2, 0 }
  0x20   : > { %p2703_p2 = scmp.ge.s32.totalorder %s3633_s24, 1  ;;  %p547_p3 = scmp.lt.s32.totalorder %s3633_s24, 3 }
  0x21   : > { %p2704_p4 = scmp.ne.s32.totalorder %s3773_s2, 0  ;;  %p3782_p5 = por %p146_p1, %p145_p0 }
  0x22   : > { %s4402_s18 = sld [smem:[#allocation43_spill]]  ;;  %p3789_p6 = pnand %p2703_p2, %p547_p3 }
  0x23   : > { %s4400_s25 = scalar_select %p3782_p5, 1, 0 }
  0x24   : > { %p3182_p7 = pneg %p3789_p6  ;;  %s3635_s4 = smov [#allocation14]  }
  0x25   : > { %4401 = sst [smem:[#allocation23_spill]] %s4400_s25  ;;  %s587_s29 = sshll.u32 %s3635_s4, 4  ;;  %s588_s29 = int_to_ptr.vmem [resolvable:$true] %s587_s29 }
  0x26   : > { %p3797_p8 = pnand %p3182_p7, %p146_p1  ;;  %s3802_s0 = sadd.s32 1, %s3633_s24  }
  0x27   : > { %4405 = sst [smem:[#allocation24_spill]] %s3802_s0  ;;  %s4370_s21 = smov 64  }
  0x28   : > { %s585_s27 = sshll.u32 %s4402_s18, 4  ;;  %s4371_s1 = smov 4   ;;  %s586_s27 = int_to_ptr.hbm [resolvable:$true] %s585_s27 }
  0x29   : > { %3188 = dma.hbm_to_vmem [thread:$0]  (!%p3797_p8), %s586_s27, 1024, %s588_s29, [#allocation13], %s4370_s21, %s4370_s21, %s4371_s1  }
  0x2a   : > { %s129_s3 = ssub.s32 %s3633_s24, %s3802_s0  ;;  %s132_s26 = sadd.s32 1, %s3629_s23 }
  0x2b   : > { %p130_p9 = scmp.eq.s32.totalorder %s129_s3, 0  ;;  %p139_p10 = scmp.ne.s32.totalorder %s3629_s23, %s3625_s22 }
  0x2c   : > { %p140_p11 = scmp.eq.s32.totalorder %s3633_s24, 0  ;;  %p3207_p12 = scmp.lt.s32.totalorder %s3633_s24, 2 }
  0x2d   : > { %s3817_s4 = scalar_select %p130_p9, %s3629_s23, %s132_s26  }
  0x2e   : > { %p141_p13 = por %p140_p11, %p139_p10  ;;  %s3820_s18 = sand.u32 1, %s3633_s24  }
  0x2f   : > { %4406 = sst [smem:[#allocation25_spill]] %s3817_s4  ;;  %s3823_s20 = sand.u32 1, %s3629_s23  }
  0x30   : > { %s3156_s19 = smul.u32 192, %s3823_s20  ;;  %p3826_p0 = pnand %p3207_p12, %p141_p13 }
  0x31   : > { %s3157_s27 = smul.u32 192, %s3633_s24  ;;  %s4408_s21 = sld [smem:[#allocation30_spill]] }
  0x32   : > { %s608_s26 = scalar_lea.vmem [#allocation6], %s3156_s19  ;;  %p3837_p3 = pneg %p3826_p0 }
  0x33   : > { %s616_s4 = sshll.u32 %s608_s26, 4  ;;  %s617_s4 = int_to_ptr.vmem [resolvable:$true] %s616_s4 }
  0x37   : > { %s613_s1 = scalar_lea.hbm %s4408_s21, %s3157_s27 }
  0x38   : > { %s614_s0 = sshll.u32 %s613_s1, 4  ;;  %s3378_s1 = scalar_lea.hbm %s4408_s21, 384  ;;  %s615_s0 = int_to_ptr.hbm [resolvable:$true] %s614_s0 }
  0x39   : > { %s3371_s23 = sshra.s32 %s615_s0, 4  ;;  %s3372_s23 = int_to_ptr.hbm [resolvable:$true] %s3371_s23 }
  0x3a   : > { %s3373_s13 = scalar_lea.hbm %s3372_s23, 192  ;;  %p3379_p10 = scmp.lt.s32.totalorder %s3372_s23, %s4408_s21 }
  0x3b   : > { %p3374_p2 = scmp.ne.s32.totalorder %s3372_s23, %s3373_s13  ;;  %p3380_p11 = scmp.lt.s32.totalorder %s3378_s1, %s3373_s13 }
  0x3d   : > { %p3376_p7 = pnand %p3837_p3, %p3374_p2  ;;  %p3381_p12 = por %p3380_p11, %p3379_p10 }
  0x3f   : > { %p3377_p9 = pneg %p3376_p7 }
  0x41   : > { %p3382_p13 = pnand %p3381_p12, %p3377_p9 }
  0x43   : > { %3385 = shalt.err (!%p3382_p13)
}
  0x44   : > { %s3638_s26 = smov 192   ;;  %s3639_s16 = smov 12  }
  0x45   : > { %s4410_s9 = scalar_lea.sflag [#allocation7], %s3820_s18  ;;  %s2708_s27 = sshll.u32 %s3823_s20, 7 }
  0x46   : > { %3192 = dma.hbm_to_vmem [thread:$0]  (!%p3826_p0), %s615_s0, 3072, %s617_s4, %s4410_s9, %s3638_s26, %s3638_s26, %s3639_s16  }
  0x47   : > { %s3073_s19 = sshll.u32 %s3633_s24, 7  ;;  %s4411_s10 = sld [smem:[#allocation36_spill]] }
  0x48   : > { %s663_s1 = scalar_lea.vmem [#allocation8], %s2708_s27  ;;  %s4412_s12 = sld [smem:[#allocation38_spill]] }
  0x49   : > { %s671_s29 = sshll.u32 %s663_s1, 4  ;;  %s692_s9 = scalar_lea.vmem [#allocation9], %s2708_s27  ;;  %s3860_s29 = int_to_ptr.vmem [resolvable:$true] %s671_s29 }
  0x4a   : > { %s700_s16 = sshll.u32 %s692_s9, 4  ;;  %s4413_s8 = sld [smem:[#allocation29_spill]]  ;;  %s701_s16 = int_to_ptr.vmem [resolvable:$true] %s700_s16 }
  0x4d   : > { %s668_s23 = scalar_lea.hbm %s4411_s10, %s3073_s19 }
  0x4e   : > { %s669_s13 = sshll.u32 %s668_s23, 4  ;;  %s697_s7 = scalar_lea.hbm %s4412_s12, %s3073_s19  ;;  %s3858_s13 = int_to_ptr.hbm [resolvable:$true] %s669_s13 }
  0x4f   : > { %s698_s0 = sshll.u32 %s697_s7, 4  ;;  %s689_s23 = scalar_lea.sflag [#allocation10], %s3820_s18  ;;  %s699_s0 = int_to_ptr.hbm [resolvable:$true] %s698_s0 }
  0x50   : > { %s568_s26 = sshll.u32 %s4413_s8, 4  ;;  %s3401_s6 = sshra.s32 %s699_s0, 4  ;;  %s3402_s6 = int_to_ptr.hbm [resolvable:$true] %s3401_s6  ;;  %s569_s26 = int_to_ptr.hbm [resolvable:$true] %s568_s26 }
  0x51   : > { %s3403_s1 = scalar_lea.hbm %s3402_s6, 128  ;;  %s3408_s27 = scalar_lea.hbm %s4412_s12, 256 }
  0x52   : > { %p3404_p2 = scmp.ne.s32.totalorder %s3402_s6, %s3403_s1  ;;  %p3409_p10 = scmp.lt.s32.totalorder %s3402_s6, %s4412_s12 }
  0x53   : > { %p3410_p11 = scmp.lt.s32.totalorder %s3408_s27, %s3403_s1 }
  0x54   : > { %p3406_p7 = pnand %p3404_p2, %p3837_p3 }
  0x55   : > { %p3411_p12 = por %p3410_p11, %p3409_p10 }
  0x56   : > { %p3407_p9 = pneg %p3406_p7 }
  0x58   : > { %p3412_p13 = pnand %p3411_p12, %p3407_p9 }
  0x5a   : > { %3415 = shalt.err (!%p3412_p13)
}
  0x5b   : > { %s4414_s3 = smov 4   ;;  %s4415_s9 = smov 64  }
  0x5c   : > { %3198 = dma.hbm_to_vmem [thread:$0]  (!%p3826_p0), %s699_s0, 2048, %s701_s16, %s689_s23, %s4415_s9, %s4415_s9, %s4414_s3  }
  0x5d   : > { %s3640_s25 = smov [#allocation3]   ;;  %s3461_s6 = sshra.s32 %s3858_s13, 4  ;;  %s3462_s6 = int_to_ptr.hbm [resolvable:$true] %s3461_s6 }
  0x5e   : > { %s570_s4 = sshll.u32 %s3640_s25, 4  ;;  %s3463_s5 = scalar_lea.hbm %s3462_s6, 128  ;;  %s571_s4 = int_to_ptr.vmem [resolvable:$true] %s570_s4 }
  0x5f   : > { %3185 = dma.hbm_to_vmem [thread:$0]  (!%p3797_p8), %s569_s26, 16, %s571_s4, [#allocation4]  }
  0x60   : > { %p3464_p2 = scmp.ne.s32.totalorder %s3462_s6, %s3463_s5  ;;  %s3468_s21 = scalar_lea.hbm %s4411_s10, 256 }
  0x61   : > { %p3469_p10 = scmp.lt.s32.totalorder %s3462_s6, %s4411_s10  ;;  %p3470_p11 = scmp.lt.s32.totalorder %s3468_s21, %s3463_s5 }
  0x62   : > { %p3466_p7 = pnand %p3464_p2, %p3837_p3 }
  0x63   : > { %p3471_p12 = por %p3470_p11, %p3469_p10 }
  0x64   : > { %p3467_p9 = pneg %p3466_p7 }
  0x66   : > { %p3472_p13 = pnand %p3471_p12, %p3467_p9 }
  0x68   : > { %3475 = shalt.err (!%p3472_p13)
}
  0x69   : > { %s3641_s30 = smov 128   ;;  %s3642_s16 = smov 8  }
  0x6a   : > { %s4416_s0 = scalar_lea.sflag [#allocation7], %s3820_s18  ;;  %s4417_s14 = sld [smem:[#allocation40_spill]] }
  0x6b   : > { %3195 = dma.hbm_to_vmem [thread:$0]  (!%p3826_p0), %s3858_s13, 2048, %s3860_s29, %s4416_s0, %s3641_s30, %s3641_s30, %s3642_s16  }
  0x6c   : > { %s719_s25 = scalar_lea.vmem [#allocation11], %s3823_s20 }
  0x6d   : > { %s726_s4 = sshll.u32 %s719_s25, 4  ;;  %s727_s4 = int_to_ptr.vmem [resolvable:$true] %s726_s4 }
  0x70   : > { %s722_s3 = scalar_lea.hbm %s4417_s14, %s3633_s24  ;;  %s3498_s13 = scalar_lea.hbm %s4417_s14, 2 }
  0x71   : > { %s724_s9 = sshll.u32 %s722_s3, 4  ;;  %s725_s9 = int_to_ptr.hbm [resolvable:$true] %s724_s9 }
  0x72   : > { %s3491_s6 = sshra.s32 %s725_s9, 4  ;;  %s3492_s6 = int_to_ptr.hbm [resolvable:$true] %s3491_s6 }
  0x73   : > { %s3493_s5 = scalar_lea.hbm %s3492_s6, 1  ;;  %p3499_p9 = scmp.lt.s32.totalorder %s3492_s6, %s4417_s14 }
  0x74   : > { %p3494_p8 = scmp.ne.s32.totalorder %s3492_s6, %s3493_s5  ;;  %p3500_p10 = scmp.lt.s32.totalorder %s3498_s13, %s3493_s5 }
  0x76   : > { %p3496_p2 = pnand %p3494_p8, %p3837_p3  ;;  %p3501_p11 = por %p3500_p10, %p3499_p9 }
  0x78   : > { %p3497_p7 = pneg %p3496_p2 }
  0x7a   : > { %p3502_p12 = pnand %p3501_p11, %p3497_p7 }
  0x7c   : > { %3505 = shalt.err (!%p3502_p12)
}
  0x7d   : > { %3201 = dma.hbm_to_vmem [thread:$0]  (!%p3826_p0), %s725_s9, 16, %s727_s4, %s689_s23  }
  0x7e   : > { %s739_s30 = scalar_lea.hbm %s4361_s15, %s3633_s24  ;;  %s736_s16 = scalar_lea.vmem [#allocation12], %s3823_s20 }
  0x7f   : > { %s743_s0 = sshll.u32 %s736_s16, 4  ;;  %s741_s26 = sshll.u32 %s739_s30, 4  ;;  %s744_s0 = int_to_ptr.vmem [resolvable:$true] %s743_s0  ;;  %s742_s26 = int_to_ptr.hbm [resolvable:$true] %s741_s26 }
  0x80   : > { %s734_s7 = scalar_lea.sflag [#allocation13], %s3820_s18  ;;  %s3521_s3 = sshra.s32 %s742_s26, 4  ;;  %s3522_s3 = int_to_ptr.hbm [resolvable:$true] %s3521_s3 }
  0x81   : > { %s3523_s25 = scalar_lea.hbm %s3522_s3, 1  ;;  %s3528_s23 = scalar_lea.hbm %s4361_s15, 2 }
  0x82   : > { %p3524_p13 = scmp.ne.s32.totalorder %s3522_s3, %s3523_s25  ;;  %p3529_p7 = scmp.lt.s32.totalorder %s3522_s3, %s4361_s15 }
  0x83   : > { %p3530_p9 = scmp.lt.s32.totalorder %s3528_s23, %s3523_s25 }
  0x84   : > { %p3526_p8 = pnand %p3524_p13, %p3837_p3 }
  0x85   : > { %p3531_p10 = por %p3530_p9, %p3529_p7 }
  0x86   : > { %p3527_p2 = pneg %p3526_p8 }
  0x88   : > { %p3532_p11 = pnand %p3531_p10, %p3527_p2 }
  0x8a   : > { %3535 = shalt.err (!%p3532_p11)
}
  0x8b   : > { %3204 = dma.hbm_to_vmem [thread:$0]  (!%p3826_p0), %s742_s26, 16, %s744_s0, %s734_s7  }
  0x8c   : > { %752 = sbr.rel (%p3789_p6) target bundleno = 3765 (0xeb5), region = 100 }
  0x91   : > { %3596 = dma.done.wait (%p146_p1), [#allocation4], 16  }
  0x92   : > { %3598 = vsyncadd (%p146_p1), [#allocation4], 4294967280  ;;  %s759_s18 = sand.u32 1, %s3773_s2   ;;  %s3942_s20 = sand.u32 1, %s3625_s22  }
  0x93   : > { %s3158_s24 = smul.u32 192, %s3942_s20  ;;  %s760_s8 = scalar_lea.sflag [#allocation7], %s759_s18 }
  0x95   : > { %s3945_s17 = scalar_lea.vmem [#allocation6], %s3158_s24 }
  0x96   : > { %3600 = dma.done.wait (%p3782_p5), %s760_s8, 5120  }
  0x97   : > { %3602 = vsyncadd (%p3782_p5), %s760_s8, 4294962176  ;;  %s2716_s28 = sshll.u32 %s3942_s20, 7  ;;  %s780_s13 = scalar_lea.sflag [#allocation10], %s759_s18 }
  0x98   : > { %s3952_s1 = scalar_lea.vmem [#allocation8], %s2716_s28  ;;  %s3954_s29 = scalar_lea.vmem [#allocation9], %s2716_s28 }
  0x99   : > { %3604 = dma.done.wait (%p3782_p5), %s780_s13, 2064  }
  0x9a   : > { %3606 = vsyncadd (%p3782_p5), %s780_s13, 4294965232  ;;  %s799_s27 = scalar_lea.sflag [#allocation13], %s759_s18 }
  0x9b   : > { %3608 = dma.done.wait (%p3782_p5), %s799_s27, 16  }
  0x9c   : > { %3610 = vsyncadd (%p3782_p5), %s799_s27, 4294967280 }
  0x9d   : > { %3612 = dma.done.wait (%p146_p1), [#allocation13], 1024  }
  0x9e   : > { %3614 = vsyncadd (%p146_p1), [#allocation13], 4294966272  ;;  %p902_p6 = scmp.lt.s32.totalorder %s3773_s2, 1  ;;  %s4419_s3 = sld [smem:[#allocation32_spill]] }
  0x9f   : > { %s4420_s23 = sld [smem:[#allocation33_spill]] }
  0xa0   : > { %s3972_s30 = scalar_select %p902_p6, %s3773_s2, 1 }
  0xa1   : > { %s4421_s18 = sld [smem:[#allocation31_spill]] }
  0xa2   : > { %s3159_s16 = smul.u32 3, %s3972_s30  ;;  %s3075_s0 = sshll.u32 %s3972_s30, 6 }
  0xa3   : > { %s4422_s13 = sld [smem:[#allocation34_spill]]  ;;  %s2721_s26 = sshll.u32 %s3972_s30, 1 }
  0xa4   : > { %s3979_s25 = scalar_lea.vmem %s4419_s3, %s3075_s0  ;;  %s4423_s10 = sld [smem:[#allocation35_spill]] }
  0xa5   : > { %s913_s9 = scalar_lea.vmem %s4420_s23, %s3972_s30  ;;  %s4424_s3 = sld [smem:[#allocation37_spill]] }
  0xa6   : > { %s4425_s23 = sld [smem:[#allocation39_spill]] }
  0xa7   : > { %s3988_s24 = scalar_lea.vmem %s4421_s18, %s3159_s16  ;;  %s4426_s18 = sld [smem:[#allocation26_spill]] (!%p2704_p4) }
  0xa8   : > { %930 = sbr.rel (%p2704_p4) target bundleno = 449 (0x1c1), region = 132  ;;  %s4427_s28 = sld [smem:[#allocation28_spill]] (!%p2704_p4) }
  0xa9   : > { %s916_s27 = scalar_lea.vmem %s4422_s13, %s3972_s30 }
  0xaa   : > { %s919_s12 = scalar_lea.vmem %s4423_s10, %s3972_s30 }
  0xab   : > { %s4002_s14 = scalar_lea.vmem %s4424_s3, %s2721_s26 }
  0xac   : > { %s926_s4 = scalar_lea.vmem %s4425_s23, %s3972_s30 }
  0xad   : > { %v931_v0 = vld [vmem:[%s4426_s18] sm:$0xff]  ;;  %v932_v1 = vld [vmem:[%s4426_s18 + $0x8] sm:$0xff]  ;;  %v3643_v2 = vmov 128.0   ;;  %v3259_v34 = vld [vmem:[#allocation3] ss:$0 sm:$0xff] }
  0xae   : > { %935 = vadd.xlane.f32.xlu0 %v931_v0  ;;  %3260 = vrcp.f32 %v3643_v2  ;;  %v3258_v31 = vld [vmem:[%s4427_s28] ss:$0 sm:$0xff] }
  0xb4   : > { %v3261_v3 = vpop.eup %3260 }
  0xb5   : > { %v940_v4 = vmul.f32 128.0, %v3261_v3  ;;  %vm944_vm0 = vweird.f32 %v3261_v3 }
  0xb6   : > { %937 = vadd.xlane.f32.xlu0 %v932_v1 }
  0xb7   : > { %v941_v5 = vsub.f32 1.0, %v940_v4 }
  0xb9   : > { %v942_v6 = vmul.f32 %v3261_v3, %v941_v5 }
  0xbb   : > { %v943_v7 = vadd.f32 %v3261_v3, %v942_v6 }
  0xbd   : > { %v945_v8 = vsel %vm944_vm0, %v3261_v3, %v943_v7 }
 0x121   : > { %v936_v9 = vpop.xlane.xlu0 %935 }
 0x122   : > { %v946_v10 = vmul.f32 %v945_v8, %v936_v9 }
 0x124   : > { %v948_v11 = vsub.f32 %v931_v0, %v946_v10 }
 0x126   : > { %v950_v12 = vmul.f32 %v948_v11, %v948_v11 }
 0x128   : > { %952 = vadd.xlane.f32.xlu1 %v950_v12 }
 0x129   : > { %v938_v13 = vpop.xlane.xlu0 %937 }
 0x12a   : > { %v947_v14 = vmul.f32 %v945_v8, %v938_v13 }
 0x12c   : > { %v949_v15 = vsub.f32 %v932_v1, %v947_v14 }
 0x12e   : > { %v951_v16 = vmul.f32 %v949_v15, %v949_v15 }
 0x130   : > { %954 = vadd.xlane.f32.xlu1 %v951_v16 }
 0x19b   : > { %v953_v17 = vpop.xlane.xlu1 %952 }
 0x19c   : > { %v956_v18 = vmul.f32 %v953_v17, %v945_v8 }
 0x19e   : > { %v958_v19 = vadd.f32 1e-12, %v956_v18 }
 0x1a0   : > { %3262 = vrsqrt.f32 %v958_v19  ;;  %vm966_vm2 = vweird.f32 %v958_v19 }
 0x1a3   : > { %v955_v20 = vpop.xlane.xlu1 %954 }
 0x1a4   : > { %v957_v21 = vmul.f32 %v955_v20, %v945_v8 }
 0x1a6   : > { %v3263_v22 = vpop.eup %3262  ;;  %v959_v23 = vadd.f32 1e-12, %v957_v21 }
 0x1a7   : > { %v961_v24 = vmul.f32 %v3263_v22, %v958_v19  ;;  %vm967_vm1 = vweird.f32 %v3263_v22 }
 0x1a8   : > { %3264 = vrsqrt.f32 %v959_v23  ;;  %vm968_vm3 = vmor %vm966_vm2, %vm967_vm1  ;;  %vm976_vm5 = vweird.f32 %v959_v23 }
 0x1a9   : > { %v962_v25 = vmul.f32 %v3263_v22, %v961_v24 }
 0x1ab   : > { %v963_v26 = vmul.f32 0.5, %v962_v25 }
 0x1ad   : > { %v964_v27 = vsub.f32 1.5, %v963_v26 }
 0x1ae   : > { %v3265_v28 = vpop.eup %3264 }
 0x1af   : > { %v965_v29 = vmul.f32 %v3263_v22, %v964_v27  ;;  %v971_v30 = vmul.f32 %v3265_v28, %v959_v23  ;;  %vm977_vm4 = vweird.f32 %v3265_v28 }
 0x1b0   : > { %vm978_vm6 = vmor %vm976_vm5, %vm977_vm4 }
 0x1b1   : > { %v969_v32 = vsel %vm968_vm3, %v3263_v22, %v965_v29  ;;  %v972_v33 = vmul.f32 %v3265_v28, %v971_v30 }
 0x1b2   : > { %v980_v35 = vmul.f32 %v969_v32, %v948_v11 }
 0x1b3   : > { %v973_v36 = vmul.f32 0.5, %v972_v33 }
 0x1b4   : > { %v985_v37 = vmul.f32 %v3258_v31, %v980_v35 }
 0x1b5   : > { %v974_v38 = vsub.f32 1.5, %v973_v36 }
 0x1b6   : > { %v990_v39 = vadd.f32 %v3259_v34, %v985_v37 }
 0x1b7   : > { %v975_v40 = vmul.f32 %v3265_v28, %v974_v38 }
 0x1b8   : > { %992 = vst [vmem:[#allocation2] sm:$0xff] %v990_v39 }
 0x1b9   : > { %v979_v41 = vsel %vm978_vm6, %v3265_v28, %v975_v40 }
 0x1ba   : > { %v981_v42 = vmul.f32 %v979_v41, %v949_v15 }
 0x1bc   : > { %v986_v43 = vmul.f32 %v3258_v31, %v981_v42 }
 0x1be   : > { %v991_v44 = vadd.f32 %v3259_v34, %v986_v43 }
 0x1c0   : > { %993 = vst [vmem:[#allocation2 + $0x8] sm:$0xff] %v991_v44 }
 0x1c1 PF: > { %v2809_v45 = vld [vmem:[%s3945_s17 + $0xa8] sm:$0xf]  ;;  %v3098_v46 = vld [vmem:[%s3945_s17 + $0xb0] sm:$0xf0]  ;;  %v3097_v47 = vld [vmem:[%s3945_s17 + $0xac] sm:$0xf] }
 0x1c2   : > { %v2810_v48 = vor.u32 %v3098_v46, %v2809_v45  ;;  %v2811_v49 = vld [vmem:[%s3945_s17 + $0xb4] sm:$0xf0]  ;;  %v2797_v50 = vld [vmem:[%s3945_s17 + $0x90] sm:$0xf]  ;;  %v3095_v51 = vld [vmem:[%s3945_s17 + $0x98] sm:$0xf0] }
 0x1c3   : > { %v2814_v52 = vor.u32 %v3097_v47, %v2811_v49  ;;  %v3094_v53 = vld [vmem:[%s3945_s17 + $0x94] sm:$0xf]  ;;  %v2799_v54 = vld [vmem:[%s3945_s17 + $0x9c] sm:$0xf0]  ;;  %v2798_v55 = vor.u32 %v3095_v51, %v2797_v50  ;;  %v2785_v57 = vld [vmem:[%s3945_s17 + $0x78] sm:$0xf] }
 0x1c4   : > { %1165 = vmatpush.bf16.msra.mxu0 %v2810_v48  ;;  %v2802_v56 = vor.u32 %v3094_v53, %v2799_v54  ;;  %v3092_v58 = vld [vmem:[%s3945_s17 + $0x80] sm:$0xf0]  ;;  %v3091_v59 = vld [vmem:[%s3945_s17 + $0x7c] sm:$0xf]  ;;  %v2787_v60 = vld [vmem:[%s3945_s17 + $0x84] sm:$0xf0] }
 0x1c5   : > { %1179 = vmatpush.bf16.msra.mxu1 %v2814_v52  ;;  %v2786_v61 = vor.u32 %v3092_v58, %v2785_v57  ;;  %v2790_v62 = vor.u32 %v3091_v59, %v2787_v60  ;;  %v2773_v63 = vld [vmem:[%s3945_s17 + $0x60] sm:$0xf]  ;;  %v3089_v0 = vld [vmem:[%s3945_s17 + $0x68] sm:$0xf0]  ;;  %v3088_v1 = vld [vmem:[%s3945_s17 + $0x64] sm:$0xf] }
 0x1c6   : > { %v2775_v2 = vld [vmem:[%s3945_s17 + $0x6c] sm:$0xf0]  ;;  %v2774_v3 = vor.u32 %v3089_v0, %v2773_v63  ;;  %v2761_v4 = vld [vmem:[%s3945_s17 + $0x48] sm:$0xf]  ;;  %v3099_v6 = vld [vmem:[%s3945_s17 + $0xb8] sm:$0xf0] }
 0x1c7   : > { %v2817_v5 = vld [vmem:[%s3945_s17 + $0xb0] sm:$0xf]  ;;  %v2778_v7 = vor.u32 %v3088_v1, %v2775_v2  ;;  %v3086_v8 = vld [vmem:[%s3945_s17 + $0x50] sm:$0xf0]  ;;  %v2805_v10 = vld [vmem:[%s3945_s17 + $0x98] sm:$0xf] }
 0x1c8   : > { %1166 = vmatpush.bf16.msra.mxu0 %v2798_v55  ;;  %v2818_v9 = vor.u32 %v3099_v6, %v2817_v5  ;;  %v3096_v11 = vld [vmem:[%s3945_s17 + $0xa0] sm:$0xf0]  ;;  %v3085_v12 = vld [vmem:[%s3945_s17 + $0x4c] sm:$0xf]  ;;  %v2763_v13 = vld [vmem:[%s3945_s17 + $0x54] sm:$0xf0]  ;;  %v2762_v15 = vor.u32 %v3086_v8, %v2761_v4 }
 0x1c9   : > { %1180 = vmatpush.bf16.msra.mxu1 %v2802_v56  ;;  %v2806_v14 = vor.u32 %v3096_v11, %v2805_v10  ;;  %v2793_v16 = vld [vmem:[%s3945_s17 + $0x80] sm:$0xf]  ;;  %v3093_v17 = vld [vmem:[%s3945_s17 + $0x88] sm:$0xf0]  ;;  %v2766_v18 = vor.u32 %v3085_v12, %v2763_v13  ;;  %v2749_v19 = vld [vmem:[%s3945_s17 + $0x30] sm:$0xf] }
 0x1ca   : > { %1193 = vmatpush.bf16.msra.mxu2 %v2818_v9  ;;  %v3083_v20 = vld [vmem:[%s3945_s17 + $0x38] sm:$0xf0]  ;;  %v3082_v21 = vld [vmem:[%s3945_s17 + $0x34] sm:$0xf]  ;;  %v2751_v22 = vld [vmem:[%s3945_s17 + $0x3c] sm:$0xf0]  ;;  %v2794_v23 = vor.u32 %v3093_v17, %v2793_v16 }
 0x1cb   : > { %v2750_v24 = vor.u32 %v3083_v20, %v2749_v19  ;;  %v2781_v25 = vld [vmem:[%s3945_s17 + $0x68] sm:$0xf]  ;;  %v3090_v26 = vld [vmem:[%s3945_s17 + $0x70] sm:$0xf0]  ;;  %v2754_v27 = vor.u32 %v3082_v21, %v2751_v22  ;;  %v2737_v28 = vld [vmem:[%s3945_s17 + $0x18] sm:$0xf] }
 0x1cc   : > { %1167 = vmatpush.bf16.msra.mxu0 %v2786_v61  ;;  %v3080_v29 = vld [vmem:[%s3945_s17 + $0x20] sm:$0xf0]  ;;  %v3079_v30 = vld [vmem:[%s3945_s17 + $0x1c] sm:$0xf]  ;;  %v2739_v31 = vld [vmem:[%s3945_s17 + $0x24] sm:$0xf0]  ;;  %v2782_v32 = vor.u32 %v3090_v26, %v2781_v25 }
 0x1cd   : > { %1181 = vmatpush.bf16.msra.mxu1 %v2790_v62  ;;  %v2738_v33 = vor.u32 %v3080_v29, %v2737_v28  ;;  %v2769_v34 = vld [vmem:[%s3945_s17 + $0x50] sm:$0xf]  ;;  %v3087_v35 = vld [vmem:[%s3945_s17 + $0x58] sm:$0xf0]  ;;  %v2742_v36 = vor.u32 %v3079_v30, %v2739_v31  ;;  %v2725_v37 = vld [vmem:[%s3945_s17] sm:$0xf] }
 0x1ce   : > { %1194 = vmatpush.bf16.msra.mxu2 %v2806_v14  ;;  %v3077_v38 = vld [vmem:[%s3945_s17 + $0x8] sm:$0xf0]  ;;  %v3076_v39 = vld [vmem:[%s3945_s17 + $0x4] sm:$0xf]  ;;  %v2727_v40 = vld [vmem:[%s3945_s17 + $0xc] sm:$0xf0]  ;;  %v2770_v42 = vor.u32 %v3087_v35, %v2769_v34 }
 0x1cf   : > { %v4061_v41 = vld [vmem:[#allocation2] sm:$0xff]  ;;  %v2726_v43 = vor.u32 %v3077_v38, %v2725_v37  ;;  %v4063_v44 = vld [vmem:[#allocation2 + $0x8] sm:$0xff]  ;;  %v3084_v46 = vld [vmem:[%s3945_s17 + $0x40] sm:$0xf0]  ;;  %v2730_v47 = vor.u32 %v3076_v39, %v2727_v40  ;;  %vm1214_vm7 = vcmask 261120   ;;  %s4428_s0 = sld [smem:[#allocation27_spill]] }
 0x1d0   : > { %1168 = vmatpush.bf16.msra.mxu0 %v2774_v3  ;;  %v2757_v45 = vld [vmem:[%s3945_s17 + $0x38] sm:$0xf]  ;;  %v996_v48 = vpack.c.bf16 %v4063_v44, %v4061_v41  ;;  %v2745_v50 = vld [vmem:[%s3945_s17 + $0x20] sm:$0xf]  ;;  %v3081_v51 = vld [vmem:[%s3945_s17 + $0x28] sm:$0xf0] }
 0x1d1   : > { %1182 = vmatpush.bf16.msra.mxu1 %v2778_v7  ;;  %v2758_v49 = vor.u32 %v3084_v46, %v2757_v45  ;;  %v2746_v52 = vor.u32 %v3081_v51, %v2745_v50  ;;  %v2733_v53 = vld [vmem:[%s3945_s17 + $0x8] sm:$0xf]  ;;  %v3078_v54 = vld [vmem:[%s3945_s17 + $0x10] sm:$0xf0]  ;;  %v4074_v56 = vld [vmem:[%s3988_s24] sm:$0x7] }
 0x1d2   : > { %1195 = vmatpush.bf16.msra.mxu2 %v2794_v23  ;;  %v2734_v55 = vor.u32 %v3078_v54, %v2733_v53  ;;  %v1031_v57 = vperm.slane %v4074_v56, 0  ;;  %v1032_v58 = vperm.slane %v4074_v56, 1  ;;  %s3644_s17 = smov 96   ;;  %v1033_v0 = vperm.slane %v4074_v56, 2  ;;  %s3645_s24 = smov 64  }
 0x1d3   : > { %vm1241_vm8 = vcmask 64512   ;;  %s3646_s7 = smov 32   ;;  %vm1485_vm9 = vcmask 523264   ;;  %vm1487_vm10 = vcmask 785408   ;;  %s4433_s30 = scalar_lea.vmem [#allocation11], %s3942_s20 }
 0x1d4   : > { %1169 = vmatpush.bf16.msra.mxu0 %v2762_v15  ;;  %p3004_p1 = scmp.ne.s32.totalorder %s3773_s2, 1 }
 0x1d5   : > { %1183 = vmatpush.bf16.msra.mxu1 %v2766_v18  ;;  %v1208_v4 = vld [vmem:[%s4428_s0] sm:$0x1]  ;;  %s4435_s19 = sld [smem:[#allocation41_spill]] (!%p3004_p1) }
 0x1d6   : > { %1196 = vmatpush.bf16.msra.mxu2 %v2782_v32  ;;  %v1209_v5 = vsub.f32 1.0, %v1208_v4  ;;  %v2831_v4 = vld [vmem:[%s4428_s0 + $0x1] sm:$0x1]  ;;  %s4436_s21 = sld [smem:[#allocation42_spill]] (!%p3004_p1) }
 0x1d8   : > { %1170 = vmatpush.bf16.msra.mxu0 %v2750_v24  ;;  %v1210_v6 = vmul.f32 -1e+09, %v1209_v5 }
 0x1d9   : > { %1184 = vmatpush.bf16.msra.mxu1 %v2754_v27 }
 0x1da   : > { %1197 = vmatpush.bf16.msra.mxu2 %v2770_v42  ;;  %v4097_v7 = vperm.slane %v1210_v6, 0  ;;  %v1492_v6 = vsub.f32 1.0, %v2831_v4 }
 0x1dc   : > { %1171 = vmatpush.bf16.msra.mxu0 %v2738_v33 }
 0x1dd   : > { %1185 = vmatpush.bf16.msra.mxu1 %v2742_v36 }
 0x1de   : > { %1198 = vmatpush.bf16.msra.mxu2 %v2758_v49 }
 0x1e0   : > { %1172 = vmatpush.bf16.msra.mxu0 %v2726_v43 }
 0x1e1   : > { %1186 = vmatpush.bf16.msra.mxu1 %v2730_v47 }
 0x1e2   : > { %1199 = vmatpush.bf16.msra.mxu2 %v2746_v52 }
 0x1e3   : > { %1173 = vmatmul.bf16.vlgmr.msra.gmra.mxu0 %v996_v48 }
 0x1e4   : > { %1187 = vmatmul.bf16.vlgmr.msra.gmra.mxu1 %v996_v48 }
 0x1e6   : > { %1200 = vmatpush.bf16.msra.mxu2 %v2734_v55 }
 0x1e9   : > { %1201 = vmatmul.bf16.vlgmr.msra.gmra.mxu2 %v996_v48 }
 0x260   : > { %v1174_v59 = vpop.f32.mrf.mxu0 }
 0x261   : > { %v1175_v60 = vadd.f32 %v1174_v59, %v1031_v57  ;;  %v1188_v61 = vpop.f32.mrf.mxu1 }
 0x262   : > { %v1189_v62 = vadd.f32 %v1188_v61, %v1032_v58 }
 0x263   : > { %v1207_v63 = vmul.f32 0.17677669, %v1175_v60 }
 0x264   : > { %1278 = vrot.lane.b32.xlu1 %v1189_v62, %s3644_s17  ;;  %2819 = vmatpush.xpose.msk.msra.mxu3 %vm1214_vm7, %v1189_v62 }
 0x267   : > { %2820 = vmatmul.msk.f32.vlgmr.msra.gmra.mxu3 %vm1214_vm7, %v1207_v63 }
 0x268   : > { %v1176_v33 = vpop.f32.mrf.mxu0 }
 0x269   : > { %v1190_v31 = vpop.f32.mrf.mxu1  ;;  %v1177_v34 = vadd.f32 %v1176_v33, %v1031_v57 }
 0x26a   : > { %v1191_v32 = vadd.f32 %v1190_v31, %v1032_v58 }
 0x26b   : > { %v1489_v35 = vmul.f32 0.17677669, %v1177_v34 }
 0x26c   : > { %1276 = vrot.lane.b32.xlu1 %v1207_v63, %s3644_s17  ;;  %v1202_v1 = vpop.f32.mrf.mxu2 }
 0x26d   : > { %v4089_v2 = vadd.f32 %v1202_v1, %v1033_v0 }
 0x26f   : > { %1271 = vmatpush.msrb.mxu3 %v4089_v2 }
 0x274   : > { %1344 = vrot.lane.b32.xlu1 %v1189_v62, %s3645_s24 }
 0x2d6   : > { %v1279_v3 = vpop.permute.xlu1 %1278 }
 0x2d7   : > { %2822 = vmatpush.xpose.msk.msra.mxu3 %vm1214_vm7, %v1279_v3 }
 0x2de   : > { %v1277_v19 = vpop.permute.xlu1 %1276 }
 0x2e6   : > { %v1345_v21 = vpop.permute.xlu1 %1344 }
 0x2ea   : > { %v1238_v8 = vpop.f32.mrf.mxu3 }
 0x2eb   : > { %v1239_v9 = vadd.f32 %v1238_v8, %v4097_v7  ;;  %v1493_v8 = vmul.f32 -1e+09, %v1492_v6 }
 0x2ed   : > { %v1242_v10 = vsel %vm1241_vm8, %v1239_v9, -inf }
 0x2ee   : > { %1243 = vmax.xlane.f32.xlu0 %v1242_v10 }
 0x361   : > { %v1244_v11 = vpop.xlane.xlu0 %1243 }
 0x362   : > { %v1245_v12 = vsub.f32 %v1239_v9, %v1244_v11  ;;  %v1495_v11 = vperm.slane %v1493_v8, 0  ;;  %v3107_v8 = vld [vmem:[%s3979_s25 + $0x38] sm:$0xff] }
 0x363   : > { %1837 = vmatpush.bf16.msrb.mxu2 %v3107_v8  ;;  %v2928_v8 = vld [vmem:[%s3952_s1 + $0x68] sm:$0xf0] }
 0x364   : > { %v1246_v13 = vmul.f32 1.442695, %v1245_v12 }
 0x366   : > { %3287 = vpow2.f32 %v1246_v13 }
 0x36c   : > { %v3288_v14 = vpop.eup %3287 }
 0x36d   : > { %v1248_v15 = vsel %vm1241_vm8, %v3288_v14, 0.0 }
 0x36e   : > { %1249 = vadd.xlane.f32.xlu0 %v1248_v15 }
 0x382   : > { %1316 = vrot.lane.b32.xlu0 %v4089_v2, %s3644_s17 }
 0x3e1   : > { %v1250_v16 = vpop.xlane.xlu0 %1249 }
 0x3e2   : > { %3289 = vrcp.f32 %v1250_v16 }
 0x3e8   : > { %v3290_v17 = vpop.eup %3289 }
 0x3e9   : > { %v1252_v18 = vmul.f32 %v3290_v17, %v3288_v14 }
 0x3eb   : > { %2821 = vmatmul.msk.f32.vlgmr.msrb.gmra.mxu3 %vm1241_vm8, %v1252_v18 }
 0x3f3   : > { %2823 = vmatmul.msk.f32.vlgmr.msra.gmra.mxu3 %vm1214_vm7, %v1277_v19 }
 0x3f4   : > { %v1317_v20 = vpop.permute.xlu0 %1316 }
 0x3f5   : > { %1337 = vmatpush.msrb.mxu3 %v1317_v20 }
 0x3f7   : > { %2825 = vmatpush.xpose.msk.msra.mxu3 %vm1214_vm7, %v1345_v21 }
 0x46e   : > { %v4107_v22 = vpop.f32.mrf.mxu3 }
 0x476   : > { %v1301_v23 = vpop.f32.mrf.mxu3 }
 0x477   : > { %v1302_v24 = vadd.f32 %v1301_v23, %v4097_v7 }
 0x479   : > { %v1304_v25 = vsel %vm1241_vm8, %v1302_v24, -inf }
 0x47a   : > { %1305 = vmax.xlane.f32.xlu2 %v1304_v25 }
 0x4ed   : > { %v1306_v26 = vpop.xlane.xlu2 %1305 }
 0x4ee   : > { %v1307_v27 = vsub.f32 %v1302_v24, %v1306_v26 }
 0x4f0   : > { %v1308_v28 = vmul.f32 1.442695, %v1307_v27 }
 0x4f2   : > { %3291 = vpow2.f32 %v1308_v28 }
 0x4f8   : > { %v3292_v29 = vpop.eup %3291 }
 0x4f9   : > { %v1310_v30 = vsel %vm1241_vm8, %v3292_v29, 0.0 }
 0x4fa   : > { %1311 = vadd.xlane.f32.xlu2 %v1310_v30 }
 0x512   : > { %1342 = vrot.lane.b32.xlu2 %v1207_v63, %s3645_s24 }
 0x51a   : > { %1381 = vrot.lane.b32.xlu2 %v4089_v2, %s3645_s24 }
 0x522   : > { %1409 = vrot.lane.b32.xlu2 %v1189_v62, %s3646_s7 }
 0x52a   : > { %1407 = vrot.lane.b32.xlu2 %v1207_v63, %s3646_s7  ;;  %v1204_v63 = vpop.f32.mrf.mxu2 }
 0x52b   : > { %v4148_v5 = vadd.f32 %v1204_v63, %v1033_v0 }
 0x532   : > { %1559 = vrot.lane.b32.xlu2 %v1191_v32, %s3644_s17 }
 0x53a   : > { %1625 = vrot.lane.b32.xlu2 %v1191_v32, %s3645_s24 }
 0x542   : > { %1690 = vrot.lane.b32.xlu2 %v1191_v32, %s3646_s7 }
 0x54a   : > { %1688 = vrot.lane.b32.xlu2 %v1489_v35, %s3646_s7 }
 0x56d   : > { %v1312_v36 = vpop.xlane.xlu2 %1311 }
 0x56e   : > { %3293 = vrcp.f32 %v1312_v36 }
 0x574   : > { %v3294_v37 = vpop.eup %3293 }
 0x575   : > { %v1314_v38 = vmul.f32 %v3294_v37, %v3292_v29  ;;  %v1343_v39 = vpop.permute.xlu2 %1342 }
 0x577   : > { %2824 = vmatmul.msk.f32.vlgmr.msrb.gmra.mxu3 %vm1241_vm8, %v1314_v38 }
 0x57d   : > { %v1382_v40 = vpop.permute.xlu2 %1381 }
 0x57e   : > { %1402 = vmatpush.msrb.mxu3 %v1382_v40 }
 0x57f   : > { %2826 = vmatmul.msk.f32.vlgmr.msra.gmra.mxu3 %vm1214_vm7, %v1343_v39 }
 0x580   : > { %2832 = vmatpush.xpose.msk.msra.mxu3 %vm1214_vm7, %v1191_v32 }
 0x585   : > { %v1410_v42 = vpop.permute.xlu2 %1409 }
 0x586   : > { %2828 = vmatpush.xpose.msk.msrb.mxu0 %vm1214_vm7, %v1410_v42 }
 0x58d   : > { %v1408_v43 = vpop.permute.xlu2 %1407 }
 0x58e   : > { %2829 = vmatmul.msk.f32.vlgmr.msrb.gmra.mxu0 %vm1214_vm7, %v1408_v43 }
 0x595   : > { %v1560_v45 = vpop.permute.xlu2 %1559 }
 0x596   : > { %2835 = vmatpush.xpose.msk.msra.mxu0 %vm1214_vm7, %v1560_v45 }
 0x59d   : > { %v1626_v46 = vpop.permute.xlu2 %1625 }
 0x59e   : > { %2838 = vmatpush.xpose.msk.msrb.mxu0 %vm1214_vm7, %v1626_v46 }
 0x5a5   : > { %v1691_v61 = vpop.permute.xlu2 %1690 }
 0x5ad   : > { %v1689_v0 = vpop.permute.xlu2 %1688 }
 0x5fa   : > { %v4132_v47 = vpop.f32.mrf.mxu3 }
 0x602   : > { %v1367_v48 = vpop.f32.mrf.mxu3 }
 0x603   : > { %v1368_v49 = vadd.f32 %v1367_v48, %v4097_v7 }
 0x605   : > { %v1370_v50 = vsel %vm1241_vm8, %v1368_v49, -inf }
 0x606   : > { %1371 = vmax.xlane.f32.xlu1 %v1370_v50 }
 0x60b   : > { %v1432_v51 = vpop.f32.mrf.mxu0 }
 0x60c   : > { %v1433_v52 = vadd.f32 %v1432_v51, %v4097_v7 }
 0x60e   : > { %v1435_v53 = vsel %vm1241_vm8, %v1433_v52, -inf }
 0x61f   : > { %1557 = vrot.lane.b32.xlu1 %v1489_v35, %s3644_s17 }
 0x649   : > { %1436 = vmax.xlane.f32.xlu1 %v1435_v53 }
 0x679   : > { %v1372_v54 = vpop.xlane.xlu1 %1371 }
 0x67a   : > { %v1373_v55 = vsub.f32 %v1368_v49, %v1372_v54 }
 0x67c   : > { %v1374_v57 = vmul.f32 1.442695, %v1373_v55 }
 0x67e   : > { %3295 = vpow2.f32 %v1374_v57 }
 0x684   : > { %v3296_v58 = vpop.eup %3295 }
 0x685   : > { %v1376_v59 = vsel %vm1241_vm8, %v3296_v58, 0.0 }
 0x686   : > { %1377 = vadd.xlane.f32.xlu0 %v1376_v59 }
 0x691   : > { %v1558_v60 = vpop.permute.xlu1 %1557 }
 0x692   : > { %2836 = vmatmul.msk.f32.vlgmr.msra.gmra.mxu0 %vm1214_vm7, %v1558_v60 }
 0x693   : > { %2841 = vmatpush.xpose.msk.msra.mxu0 %vm1214_vm7, %v1691_v61 }
 0x69a   : > { %1623 = vrot.lane.b32.xlu0 %v1489_v35, %s3645_s24 }
 0x6bc   : > { %v1437_v7 = vpop.xlane.xlu1 %1436 }
 0x6bd   : > { %v1438_v9 = vsub.f32 %v1433_v52, %v1437_v7 }
 0x6bf   : > { %v1439_v12 = vmul.f32 1.442695, %v1438_v9  ;;  %v3106_v9 = vld [vmem:[%s3979_s25 + $0x30] sm:$0xff] }
 0x6c0   : > { %1838 = vmatpush.bf16.msrb.mxu2 %v3106_v9 }
 0x6f9   : > { %v1378_v62 = vpop.xlane.xlu0 %1377 }
 0x6fa   : > { %3297 = vrcp.f32 %v1378_v62 }
 0x6fb   : > { %3299 = vpow2.f32 %v1439_v12 }
 0x700   : > { %v3298_v1 = vpop.eup %3297 }
 0x701   : > { %v1380_v3 = vmul.f32 %v3298_v1, %v3296_v58  ;;  %v3300_v15 = vpop.eup %3299 }
 0x702   : > { %v1441_v16 = vsel %vm1241_vm8, %v3300_v15, 0.0 }
 0x703   : > { %2827 = vmatmul.msk.f32.vlgmr.msrb.gmra.mxu3 %vm1241_vm8, %v1380_v3 }
 0x704   : > { %1552 = vmatpush.msrb.mxu3 %v4148_v5 }
 0x70b   : > { %2833 = vmatmul.msk.f32.vlgmr.msra.gmra.mxu3 %vm1214_vm7, %v1489_v35 }
 0x70c   : > { %v1624_v10 = vpop.permute.xlu0 %1623 }
 0x70d   : > { %2839 = vmatmul.msk.f32.vlgmr.msrb.gmra.mxu0 %vm1214_vm7, %v1624_v10  ;;  %v3105_v10 = vld [vmem:[%s3979_s25 + $0x28] sm:$0xff] }
 0x70e   : > { %1839 = vmatpush.bf16.msrb.mxu2 %v3105_v10  ;;  %v2918_v10 = vld [vmem:[%s3952_s1 + $0x50] sm:$0xf] }
 0x70f   : > { %v1582_v13 = vpop.f32.mrf.mxu0 }
 0x710   : > { %v1583_v14 = vadd.f32 %v1582_v13, %v1495_v11 }
 0x712   : > { %v1585_v56 = vsel %vm1241_vm8, %v1583_v14, -inf }
 0x713   : > { %1586 = vmax.xlane.f32.xlu0 %v1585_v56 }
 0x715   : > { %2842 = vmatmul.msk.f32.vlgmr.msra.gmra.mxu0 %vm1214_vm7, %v1689_v0 }
 0x71b   : > { %1442 = vadd.xlane.f32.xlu0 %v1441_v16 }
 0x72f   : > { %1446 = vrot.lane.b32.xlu0 %v4089_v2, %s3646_s7 }
 0x737   : > { %1727 = vrot.lane.b32.xlu0 %v4148_v5, %s3646_s7 }
 0x786   : > { %v4161_v17 = vpop.f32.mrf.mxu3  ;;  %v1587_v19 = vpop.xlane.xlu0 %1586 }
 0x787   : > { %v1588_v24 = vsub.f32 %v1583_v14, %v1587_v19  ;;  %v3103_v19 = vld [vmem:[%s3979_s25 + $0x18] sm:$0xff] }
 0x789   : > { %v1589_v28 = vmul.f32 1.442695, %v1588_v24 }
 0x78a   : > { %v1648_v18 = vpop.f32.mrf.mxu0 }
 0x78b   : > { %v1649_v20 = vadd.f32 %v1648_v18, %v1495_v11  ;;  %3301 = vpow2.f32 %v1589_v28 }
 0x78d   : > { %v1651_v21 = vsel %vm1241_vm8, %v1649_v20, -inf }
 0x78e   : > { %v1520_v23 = vpop.f32.mrf.mxu3  ;;  %1652 = vmax.xlane.f32.xlu1 %v1651_v21  ;;  %v1443_v2 = vpop.xlane.xlu0 %1442  ;;  %v3101_v21 = vld [vmem:[%s3979_s25 + $0x8] sm:$0xff] }
 0x78f   : > { %v1521_v25 = vadd.f32 %v1520_v23, %v1495_v11  ;;  %3303 = vrcp.f32 %v1443_v2  ;;  %v3100_v23 = vld [vmem:[%s3979_s25] sm:$0xff] }
 0x791   : > { %v1523_v26 = vsel %vm1241_vm8, %v1521_v25, -inf  ;;  %v3302_v31 = vpop.eup %3301 }
 0x792   : > { %1524 = vmax.xlane.f32.xlu2 %v1523_v26  ;;  %v1713_v27 = vpop.f32.mrf.mxu0  ;;  %v1591_v34 = vsel %vm1241_vm8, %v3302_v31, 0.0 }
 0x793   : > { %v1714_v29 = vadd.f32 %v1713_v27, %v1495_v11  ;;  %v3104_v11 = vld [vmem:[%s3979_s25 + $0x20] sm:$0xff] }
 0x794   : > { %1840 = vmatpush.bf16.msrb.mxu2 %v3104_v11  ;;  %v3119_v11 = vld [vmem:[%s3952_s1 + $0x54] sm:$0xf0] }
 0x795   : > { %v1716_v30 = vsel %vm1241_vm8, %v1714_v29, -inf  ;;  %v3304_v32 = vpop.eup %3303 }
 0x796   : > { %v1445_v35 = vmul.f32 %v3304_v32, %v3300_v15 }
 0x798   : > { %1841 = vmatpush.bf16.msrb.mxu2 %v3103_v19  ;;  %v2912_v19 = vld [vmem:[%s3952_s1 + $0x48] sm:$0xf0] }
 0x79a   : > { %1717 = vmax.xlane.f32.xlu2 %v1716_v30 }
 0x7a1   : > { %v1447_v33 = vpop.permute.xlu0 %1446 }
 0x7a2   : > { %1592 = vadd.xlane.f32.xlu2 %v1591_v34  ;;  %1467 = vmatpush.msrb.mxu1 %v1447_v33 }
 0x7a3   : > { %2830 = vmatmul.msk.f32.vlgmr.msrb.gmra.mxu1 %vm1241_vm8, %v1445_v35 }
 0x801   : > { %v1653_v36 = vpop.xlane.xlu1 %1652 }
 0x802   : > { %v1654_v37 = vsub.f32 %v1649_v20, %v1653_v36  ;;  %v3102_v20 = vld [vmem:[%s3979_s25 + $0x10] sm:$0xff] }
 0x803   : > { %1842 = vmatpush.bf16.msrb.mxu2 %v3102_v20 }
 0x804   : > { %v1655_v38 = vmul.f32 1.442695, %v1654_v37  ;;  %v3281_v37 = vld [vmem:[%s913_s9] ss:$0 sm:$0xff] }
 0x805   : > { %v1525_v39 = vpop.xlane.xlu2 %1524 }
 0x806   : > { %3305 = vpow2.f32 %v1655_v38  ;;  %v1526_v40 = vsub.f32 %v1521_v25, %v1525_v39 }
 0x807   : > { %1843 = vmatpush.bf16.msrb.mxu2 %v3101_v21  ;;  %v2902_v21 = vld [vmem:[%s3952_s1 + $0x30] sm:$0xf] }
 0x808   : > { %v1527_v42 = vmul.f32 1.442695, %v1526_v40 }
 0x80a   : > { %3307 = vpow2.f32 %v1527_v42 }
 0x80b   : > { %1844 = vmatpush.bf16.msrb.mxu2 %v3100_v23  ;;  %v3115_v23 = vld [vmem:[%s3952_s1 + $0x34] sm:$0xf0] }
 0x80c   : > { %v3306_v43 = vpop.eup %3305 }
 0x80d   : > { %v1718_v45 = vpop.xlane.xlu2 %1717  ;;  %v1657_v46 = vsel %vm1241_vm8, %v3306_v43, 0.0 }
 0x80e   : > { %v1719_v48 = vsub.f32 %v1714_v29, %v1718_v45  ;;  %1658 = vadd.xlane.f32.xlu1 %v1657_v46  ;;  %v3647_v45 = vmov 128.0  }
 0x810   : > { %v1720_v49 = vmul.f32 1.442695, %v1719_v48  ;;  %v3308_v50 = vpop.eup %3307 }
 0x811   : > { %v1529_v51 = vsel %vm1241_vm8, %v3308_v50, 0.0 }
 0x812   : > { %3309 = vpow2.f32 %v1720_v49 }
 0x815   : > { %v1593_v55 = vpop.xlane.xlu2 %1592 }
 0x816   : > { %1530 = vadd.xlane.f32.xlu1 %v1529_v51 }
 0x818   : > { %v3310_v52 = vpop.eup %3309 }
 0x819   : > { %v1722_v53 = vsel %vm1241_vm8, %v3310_v52, 0.0 }
 0x81a   : > { %1723 = vadd.xlane.f32.xlu2 %v1722_v53 }
 0x820   : > { %v1469_v13 = vpop.f32.mrf.mxu1 }
 0x82f   : > { %1597 = vrot.lane.b32.xlu1 %v4148_v5, %s3644_s17 }
 0x832   : > { %1662 = vrot.lane.b32.xlu2 %v4148_v5, %s3645_s24  ;;  %v1728_v5 = vpop.permute.xlu0 %1727 }
 0x881   : > { %v1659_v54 = vpop.xlane.xlu1 %1658 }
 0x889   : > { %v1531_v57 = vpop.xlane.xlu1 %1530 }
 0x88a   : > { %3311 = vrcp.f32 %v1531_v57 }
 0x88b   : > { %3313 = vrcp.f32 %v1659_v54 }
 0x88c   : > { %3315 = vrcp.f32 %v1593_v55 }
 0x88d   : > { %v1724_v58 = vpop.xlane.xlu2 %1723 }
 0x88e   : > { %3317 = vrcp.f32 %v1724_v58 }
 0x88f   : > { %3319 = vrcp.f32 %v3647_v45 }
 0x890   : > { %v3312_v59 = vpop.eup %3311 }
 0x891   : > { %v1533_v60 = vmul.f32 %v3312_v59, %v3308_v50  ;;  %v3314_v62 = vpop.eup %3313 }
 0x892   : > { %v1661_v63 = vmul.f32 %v3314_v62, %v3306_v43  ;;  %v3316_v1 = vpop.eup %3315  ;;  %v3122_v62 = vld [vmem:[%s3952_s1 + $0x74] sm:$0xf] }
 0x893   : > { %2834 = vmatmul.msk.f32.vlgmr.msrb.gmra.mxu3 %vm1241_vm8, %v1533_v60  ;;  %v1595_v3 = vmul.f32 %v3316_v1, %v3302_v31  ;;  %v2934_v60 = vld [vmem:[%s3952_s1 + $0x70] sm:$0xf]  ;;  %v2936_v1 = vld [vmem:[%s3952_s1 + $0x78] sm:$0xf0] }
 0x894   : > { %v3318_v6 = vpop.eup %3317 }
 0x895   : > { %v1663_v61 = vpop.permute.xlu2 %1662  ;;  %v1726_v7 = vmul.f32 %v3318_v6, %v3310_v52  ;;  %v3320_v46 = vpop.eup %3319  ;;  %v3120_v6 = vld [vmem:[%s3952_s1 + $0x64] sm:$0xf] }
 0x896   : > { %1683 = vmatpush.msra.mxu3 %v1663_v61  ;;  %v1860_v48 = vmul.f32 128.0, %v3320_v46  ;;  %vm1864_vm11 = vweird.f32 %v3320_v46  ;;  %v3123_v61 = vld [vmem:[%s3952_s1 + $0x74] sm:$0xf0]  ;;  %v2931_v9 = vor.u32 %v3120_v6, %v2928_v8 }
 0x898   : > { %v1861_v49 = vsub.f32 1.0, %v1860_v48 }
 0x89a   : > { %v1862_v50 = vmul.f32 %v3320_v46, %v1861_v49 }
 0x89b   : > { %2840 = vmatmul.msk.f32.vlgmr.msra.gmra.mxu3 %vm1241_vm8, %v1661_v63  ;;  %v2935_v63 = vor.u32 %v3123_v61, %v2934_v60 }
 0x89c   : > { %v1863_v51 = vadd.f32 %v3320_v46, %v1862_v50 }
 0x89d   : > { %2015 = vmatpush.bf16.msrb.mxu3 %v2935_v63 }
 0x89e   : > { %v4202_v52 = vsel %vm1864_vm11, %v3320_v46, %v1863_v51 }
 0x8a1   : > { %v1598_v4 = vpop.permute.xlu1 %1597 }
 0x8a2   : > { %1618 = vmatpush.msra.mxu1 %v1598_v4  ;;  %v2926_v4 = vld [vmem:[%s3952_s1 + $0x60] sm:$0xf] }
 0x8a3   : > { %2837 = vmatmul.msk.f32.vlgmr.msra.gmra.mxu1 %vm1241_vm8, %v1595_v3  ;;  %v2939_v3 = vor.u32 %v3122_v62, %v2936_v1 }
 0x8a4   : > { %1748 = vmatpush.msrb.mxu1 %v1728_v5  ;;  %v3121_v5 = vld [vmem:[%s3952_s1 + $0x64] sm:$0xf0] }
 0x8a5   : > { %2029 = vmatpush.bf16.msrb.mxu0 %v2939_v3 }
 0x8a9   : > { %2030 = vmatpush.bf16.msrb.mxu0 %v2931_v9 }
 0x8ab   : > { %2843 = vmatmul.msk.f32.vlgmr.msrb.gmra.mxu1 %vm1241_vm8, %v1726_v7  ;;  %v2927_v7 = vor.u32 %v3121_v5, %v2926_v4  ;;  %v3282_v4 = vld [vmem:[%s916_s27] ss:$0 sm:$0xff]  ;;  %s4434_s27 = scalar_lea.vmem [#allocation12], %s3942_s20 }
 0x8ad   : > { %2016 = vmatpush.bf16.msrb.mxu3 %v2927_v7 }
 0x916   : > { %v1554_v12 = vpop.f32.mrf.mxu3 }
 0x91e   : > { %v1685_v14 = vpop.f32.mrf.mxu3 }
 0x91f   : > { %v3271_v56 = vpack.i.bf16 %v1685_v14, %v4161_v17  ;;  %v2920_v14 = vld [vmem:[%s3952_s1 + $0x58] sm:$0xf0] }
 0x920   : > { %v1620_v0 = vpop.f32.mrf.mxu1 }
 0x921   : > { %v3266_v15 = vpack.i.bf16 %v1620_v0, %v4132_v47  ;;  %3272 = vrot.lane.b32.xlu1 %v3271_v56, %s3645_s24  ;;  %v2910_v0 = vld [vmem:[%s3952_s1 + $0x40] sm:$0xf] }
 0x923   : > { %3267 = vrot.lane.b32.xlu0 %v3266_v15, %s3646_s7  ;;  %v3117_v15 = vld [vmem:[%s3952_s1 + $0x44] sm:$0xf0] }
 0x928   : > { %v1750_v16 = vpop.f32.mrf.mxu1 }
 0x929   : > { %v3276_v18 = vpack.i.bf16 %v1750_v16, %v1469_v13  ;;  %v2919_v13 = vor.u32 %v3119_v11, %v2918_v10  ;;  %v3116_v16 = vld [vmem:[%s3952_s1 + $0x44] sm:$0xf] }
 0x92a   : > { %v2915_v20 = vor.u32 %v3116_v16, %v2912_v19  ;;  %v3129_v16 = vld [vmem:[%s3954_s29 + $0x28] sm:$0xff]  ;;  %v3128_v19 = vld [vmem:[%s3954_s29 + $0x20] sm:$0xff] }
 0x92b   : > { %3277 = vrot.lane.b32.xlu0 %v3276_v18, %s3644_s17  ;;  %2017 = vmatpush.bf16.msrb.mxu3 %v2919_v13  ;;  %v2911_v18 = vor.u32 %v3117_v15, %v2910_v0  ;;  %v3138_v13 = vld [vmem:[%s3954_s29 + $0x70] sm:$0xff]  ;;  %v3136_v15 = vld [vmem:[%s3954_s29 + $0x60] sm:$0xff] }
 0x92c   : > { %v3130_v0 = vld [vmem:[%s3954_s29 + $0x30] sm:$0xff] }
 0x92f   : > { %2018 = vmatpush.bf16.msrb.mxu3 %v2911_v18  ;;  %v3135_v18 = vld [vmem:[%s3954_s29 + $0x58] sm:$0xff] }
 0x993   : > { %v3273_v47 = vpop.permute.xlu1 %3272 }
 0x994   : > { %v3275_v28 = vunpack.i.h.bf16 %v3273_v47  ;;  %v3274_v2 = vunpack.i.l.bf16 %v3273_v47 }
 0x995   : > { %v3268_v17 = vpop.permute.xlu0 %3267 }
 0x996   : > { %v3270_v24 = vunpack.i.h.bf16 %v3268_v17  ;;  %v3269_v25 = vunpack.i.l.bf16 %v3268_v17  ;;  %v3114_v17 = vld [vmem:[%s3952_s1 + $0x34] sm:$0xf] }
 0x998   : > { %v1765_v26 = vsel %vm1214_vm7, %v1554_v12, %v3270_v24  ;;  %v1484_v27 = vsel %vm1214_vm7, %v4107_v22, %v3269_v25  ;;  %v3118_v12 = vld [vmem:[%s3952_s1 + $0x54] sm:$0xf]  ;;  %v2903_v24 = vor.u32 %v3115_v23, %v2902_v21  ;;  %v2904_v25 = vld [vmem:[%s3952_s1 + $0x38] sm:$0xf0]  ;;  %v3133_v23 = vld [vmem:[%s3954_s29 + $0x48] sm:$0xff] }
 0x999   : > { %v1486_v32 = vsel %vm1485_vm9, %v1484_v27, %v3274_v2  ;;  %v1766_v33 = vsel %vm1485_vm9, %v1765_v26, %v3275_v28  ;;  %v2923_v56 = vor.u32 %v3118_v12, %v2920_v14  ;;  %v2907_v47 = vor.u32 %v3114_v17, %v2904_v25  ;;  %v2894_v26 = vld [vmem:[%s3952_s1 + $0x20] sm:$0xf]  ;;  %v3113_v27 = vld [vmem:[%s3952_s1 + $0x24] sm:$0xf0]  ;;  %v3112_v28 = vld [vmem:[%s3952_s1 + $0x24] sm:$0xf] }
 0x99a   : > { %2019 = vmatpush.bf16.msrb.mxu3 %v2903_v24  ;;  %v2895_v2 = vor.u32 %v3113_v27, %v2894_v26  ;;  %v3131_v14 = vld [vmem:[%s3954_s29 + $0x38] sm:$0xff]  ;;  %v1929_v17 = vld [vmem:[%s4002_s14] sm:$0x3]  ;;  %v3126_v24 = vld [vmem:[%s3954_s29 + $0x10] sm:$0xff]  ;;  %s4437_s14 = sld [smem:[#allocation44_spill]] (!%p3004_p1) }
 0x99b   : > { %2031 = vmatpush.bf16.msrb.mxu0 %v2923_v56  ;;  %2213 = vmatpush.bf16.msra.mxu1 %v3131_v14  ;;  %v3137_v56 = vld [vmem:[%s3954_s29 + $0x68] sm:$0xff]  ;;  %v3127_v21 = vld [vmem:[%s3954_s29 + $0x18] sm:$0xff]  ;;  %v3132_v25 = vld [vmem:[%s3954_s29 + $0x40] sm:$0xff] }
 0x99c   : > { %v3125_v26 = vld [vmem:[%s3954_s29 + $0x8] sm:$0xff] }
 0x99d   : > { %v3278_v29 = vpop.permute.xlu0 %3277 }
 0x99e   : > { %v3280_v30 = vunpack.i.h.bf16 %v3278_v29  ;;  %v3279_v31 = vunpack.i.l.bf16 %v3278_v29  ;;  %v2896_v29 = vld [vmem:[%s3952_s1 + $0x28] sm:$0xf0]  ;;  %2020 = vmatpush.bf16.msrb.mxu3 %v2895_v2  ;;  %v3124_v2 = vld [vmem:[%s3954_s29] sm:$0xff] }
 0x99f   : > { %2032 = vmatpush.bf16.msrb.mxu0 %v2915_v20  ;;  %2214 = vmatpush.bf16.msra.mxu1 %v3130_v0  ;;  %v3134_v20 = vld [vmem:[%s3954_s29 + $0x50] sm:$0xff]  ;;  %v3284_v0 = vld [vmem:[%s926_s4] ss:$0 sm:$0xff] }
 0x9a0   : > { %v1488_v34 = vsel %vm1487_vm10, %v1486_v32, %v3279_v31  ;;  %v1767_v35 = vsel %vm1487_vm10, %v1766_v33, %v3280_v30  ;;  %v2899_v30 = vor.u32 %v3112_v28, %v2896_v29  ;;  %v2886_v31 = vld [vmem:[%s3952_s1 + $0x10] sm:$0xf]  ;;  %v3111_v32 = vld [vmem:[%s3952_s1 + $0x14] sm:$0xf0]  ;;  %v3110_v33 = vld [vmem:[%s3952_s1 + $0x14] sm:$0xf] }
 0x9a1   : > { %v1768_v36 = vpack.c.bf16 %v1767_v35, %v1488_v34  ;;  %v2887_v34 = vor.u32 %v3111_v32, %v2886_v31  ;;  %v2888_v35 = vld [vmem:[%s3952_s1 + $0x18] sm:$0xf0] }
 0x9a3   : > { %1845 = vmatmul.bf16.vlgmr.msrb.gmra.mxu2 %v1768_v36  ;;  %2033 = vmatpush.bf16.msrb.mxu0 %v2907_v47  ;;  %v2878_v36 = vld [vmem:[%s3952_s1] sm:$0xf]  ;;  %v1932_v47 = vperm.slane %v1929_v17, 1 }
 0x9a4   : > { %2021 = vmatpush.bf16.msrb.mxu3 %v2887_v34  ;;  %2215 = vmatpush.bf16.msra.mxu1 %v3129_v16 }
 0x9a7   : > { %2034 = vmatpush.bf16.msrb.mxu0 %v2899_v30  ;;  %v1931_v30 = vperm.slane %v1929_v17, 0 }
 0x9a8   : > { %2216 = vmatpush.bf16.msra.mxu1 %v3128_v19 }
 0x9ac   : > { %2217 = vmatpush.bf16.msra.mxu1 %v3127_v21 }
 0x9b0   : > { %2218 = vmatpush.bf16.msra.mxu1 %v3126_v24 }
 0x9b4   : > { %2219 = vmatpush.bf16.msra.mxu1 %v3125_v26 }
 0x9b8   : > { %2220 = vmatpush.bf16.msra.mxu1 %v3124_v2 }
 0xa26   : > { %v1846_v38 = vpop.f32.mrf.mxu2 }
 0xa27   : > { %v1847_v22 = vadd.f32 %v3281_v37, %v1846_v38 }
 0xa29   : > { %v1851_v39 = vadd.f32 %v1847_v22, %v4061_v41  ;;  %v2891_v22 = vor.u32 %v3110_v33, %v2888_v35 }
 0xa2b   : > { %1855 = vadd.xlane.f32.xlu2 %v1851_v39  ;;  %2035 = vmatpush.bf16.msrb.mxu0 %v2891_v22 }
 0xa2e   : > { %v1848_v40 = vpop.f32.mrf.mxu2 }
 0xa2f   : > { %v1849_v42 = vadd.f32 %v3281_v37, %v1848_v40  ;;  %v3109_v37 = vld [vmem:[%s3952_s1 + $0x4] sm:$0xf0]  ;;  %v2880_v40 = vld [vmem:[%s3952_s1 + $0x8] sm:$0xf0] }
 0xa31   : > { %v1852_v43 = vadd.f32 %v1849_v42, %v4063_v44 }
 0xa33   : > { %1857 = vadd.xlane.f32.xlu1 %v1852_v43 }
 0xa9e   : > { %v1856_v41 = vpop.xlane.xlu2 %1855 }
 0xa9f   : > { %v1866_v53 = vmul.f32 %v4202_v52, %v1856_v41 }
 0xaa1   : > { %v4205_v54 = vsub.f32 %v1851_v39, %v1866_v53  ;;  %v3108_v39 = vld [vmem:[%s3952_s1 + $0x4] sm:$0xf] }
 0xaa2   : > { %v2883_v45 = vor.u32 %v3108_v39, %v2880_v40 }
 0xaa3   : > { %v1870_v44 = vmul.f32 %v4205_v54, %v4205_v54 }
 0xaa4   : > { %2036 = vmatpush.bf16.msrb.mxu0 %v2883_v45 }
 0xaa5   : > { %1872 = vadd.xlane.f32.xlu0 %v1870_v44 }
 0xaa6   : > { %v1858_v55 = vpop.xlane.xlu1 %1857 }
 0xaa7   : > { %v1867_v57 = vmul.f32 %v4202_v52, %v1858_v55 }
 0xaa9   : > { %v4210_v58 = vsub.f32 %v1852_v43, %v1867_v57  ;;  %v2879_v43 = vor.u32 %v3109_v37, %v2878_v36 }
 0xaab   : > { %v1871_v59 = vmul.f32 %v4210_v58, %v4210_v58  ;;  %2022 = vmatpush.bf16.msrb.mxu3 %v2879_v43 }
 0xaad   : > { %1874 = vadd.xlane.f32.xlu2 %v1871_v59 }
 0xb18   : > { %v1873_v38 = vpop.xlane.xlu0 %1872 }
 0xb19   : > { %v1876_v42 = vmul.f32 %v1873_v38, %v4202_v52 }
 0xb1b   : > { %v1878_v46 = vadd.f32 1e-12, %v1876_v42 }
 0xb1d   : > { %3321 = vrsqrt.f32 %v1878_v46  ;;  %vm1886_vm13 = vweird.f32 %v1878_v46 }
 0xb20   : > { %v1875_v48 = vpop.xlane.xlu2 %1874 }
 0xb21   : > { %v1877_v49 = vmul.f32 %v1875_v48, %v4202_v52 }
 0xb23   : > { %v3322_v50 = vpop.eup %3321  ;;  %v1879_v51 = vadd.f32 1e-12, %v1877_v49 }
 0xb24   : > { %v1881_v41 = vmul.f32 %v3322_v50, %v1878_v46  ;;  %vm1887_vm12 = vweird.f32 %v3322_v50 }
 0xb25   : > { %3323 = vrsqrt.f32 %v1879_v51  ;;  %vm1888_vm14 = vmor %vm1886_vm13, %vm1887_vm12  ;;  %vm1896_vm0 = vweird.f32 %v1879_v51 }
 0xb26   : > { %v1882_v53 = vmul.f32 %v3322_v50, %v1881_v41 }
 0xb28   : > { %v1883_v44 = vmul.f32 0.5, %v1882_v53 }
 0xb2a   : > { %v1884_v55 = vsub.f32 1.5, %v1883_v44 }
 0xb2b   : > { %v3324_v57 = vpop.eup %3323 }
 0xb2c   : > { %v1885_v59 = vmul.f32 %v3322_v50, %v1884_v55  ;;  %v1891_v60 = vmul.f32 %v3324_v57, %v1879_v51  ;;  %vm1897_vm15 = vweird.f32 %v3324_v57 }
 0xb2d   : > { %vm1898_vm1 = vmor %vm1896_vm0, %vm1897_vm15 }
 0xb2e   : > { %v1892_v61 = vmul.f32 %v3324_v57, %v1891_v60  ;;  %v1889_v62 = vsel %vm1888_vm14, %v3322_v50, %v1885_v59 }
 0xb2f   : > { %v1900_v3 = vmul.f32 %v1889_v62, %v4205_v54  ;;  %v3283_v54 = vld [vmem:[%s919_s12] ss:$0 sm:$0xff] }
 0xb30   : > { %v1893_v63 = vmul.f32 0.5, %v1892_v61 }
 0xb31   : > { %v1905_v8 = vmul.f32 %v3282_v4, %v1900_v3 }
 0xb32   : > { %v1894_v1 = vsub.f32 1.5, %v1893_v63 }
 0xb33   : > { %v4260_v10 = vadd.f32 %v3283_v54, %v1905_v8 }
 0xb34   : > { %v1895_v5 = vmul.f32 %v3324_v57, %v1894_v1 }
 0xb36   : > { %v1899_v6 = vsel %vm1898_vm1, %v3324_v57, %v1895_v5 }
 0xb37   : > { %v1901_v7 = vmul.f32 %v1899_v6, %v4210_v58  ;;  %v3139_v58 = vld [vmem:[%s3954_s29 + $0x78] sm:$0xff] }
 0xb38   : > { %2227 = vmatpush.bf16.msra.mxu2 %v3139_v58 }
 0xb39   : > { %v1906_v9 = vmul.f32 %v3282_v4, %v1901_v7 }
 0xb3b   : > { %v4262_v11 = vadd.f32 %v3283_v54, %v1906_v9 }
 0xb3c   : > { %2228 = vmatpush.bf16.msra.mxu2 %v3138_v13 }
 0xb3d   : > { %v1912_v12 = vpack.c.bf16 %v4262_v11, %v4260_v10 }
 0xb3f   : > { %2023 = vmatmul.bf16.vlgmr.msrb.gmra.mxu3 %v1912_v12  ;;  %2037 = vmatmul.bf16.vlgmr.msrb.gmra.mxu0 %v1912_v12 }
 0xb40   : > { %2229 = vmatpush.bf16.msra.mxu2 %v3137_v56 }
 0xb44   : > { %2230 = vmatpush.bf16.msra.mxu2 %v3136_v15 }
 0xb48   : > { %2231 = vmatpush.bf16.msra.mxu2 %v3135_v18 }
 0xb4c   : > { %2232 = vmatpush.bf16.msra.mxu2 %v3134_v20 }
 0xb50   : > { %2233 = vmatpush.bf16.msra.mxu2 %v3133_v23 }
 0xb54   : > { %2234 = vmatpush.bf16.msra.mxu2 %v3132_v25 }
 0xbbc   : > { %v2038_v27 = vpop.f32.mrf.mxu0 }
 0xbbd   : > { %v2039_v28 = vadd.f32 %v2038_v27, %v1932_v47 }
 0xbbf   : > { %v2048_v29 = vmul.f32 0.044715, %v2039_v28  ;;  %v2044_v63 = vmul.f32 0.5, %v2039_v28 }
 0xbc1   : > { %v2052_v31 = vmul.f32 %v2048_v29, %v2039_v28 }
 0xbc2   : > { %v2024_v32 = vpop.f32.mrf.mxu3 }
 0xbc3   : > { %v2056_v33 = vmul.f32 %v2052_v31, %v2039_v28  ;;  %v2025_v34 = vadd.f32 %v2024_v32, %v1931_v30 }
 0xbc4   : > { %v2040_v35 = vpop.f32.mrf.mxu0 }
 0xbc5   : > { %v2060_v36 = vadd.f32 %v2056_v33, %v2039_v28  ;;  %v2047_v37 = vmul.f32 0.044715, %v2025_v34  ;;  %v2041_v38 = vadd.f32 %v2040_v35, %v1932_v47  ;;  %v2043_v9 = vmul.f32 0.5, %v2025_v34 }
 0xbc7   : > { %v2051_v22 = vmul.f32 %v2047_v37, %v2025_v34  ;;  %v2050_v39 = vmul.f32 0.044715, %v2041_v38  ;;  %v2064_v40 = vmul.f32 0.7978846, %v2060_v36  ;;  %v2046_v1 = vmul.f32 0.5, %v2041_v38 }
 0xbc9   : > { %v2055_v42 = vmul.f32 %v2051_v22, %v2025_v34  ;;  %v2054_v43 = vmul.f32 %v2050_v39, %v2041_v38  ;;  %3325 = vtanh.f32 %v2064_v40 }
 0xbca   : > { %v2026_v45 = vpop.f32.mrf.mxu3 }
 0xbcb   : > { %v2059_v46 = vadd.f32 %v2055_v42, %v2025_v34  ;;  %v2058_v48 = vmul.f32 %v2054_v43, %v2041_v38  ;;  %v2027_v49 = vadd.f32 %v2026_v45, %v1931_v30  ;;  %v3285_v45 = vld [vmem:[%s4433_s30] ss:$0 sm:$0xff] }
 0xbcd   : > { %v2062_v50 = vadd.f32 %v2058_v48, %v2041_v38  ;;  %v2049_v51 = vmul.f32 0.044715, %v2027_v49  ;;  %v2063_v41 = vmul.f32 0.7978846, %v2059_v46  ;;  %v2045_v12 = vmul.f32 0.5, %v2027_v49 }
 0xbcf   : > { %v2066_v53 = vmul.f32 0.7978846, %v2062_v50  ;;  %v2053_v44 = vmul.f32 %v2049_v51, %v2027_v49  ;;  %v3326_v57 = vpop.eup %3325 }
 0xbd0   : > { %v2072_v61 = vadd.f32 1.0, %v3326_v57 }
 0xbd1   : > { %v2057_v55 = vmul.f32 %v2053_v44, %v2027_v49  ;;  %3327 = vtanh.f32 %v2066_v53 }
 0xbd2   : > { %3329 = vtanh.f32 %v2063_v41  ;;  %v2076_v5 = vmul.f32 %v2072_v61, %v2044_v63 }
 0xbd3   : > { %v2061_v59 = vadd.f32 %v2057_v55, %v2027_v49 }
 0xbd5   : > { %v2065_v60 = vmul.f32 0.7978846, %v2061_v59 }
 0xbd7   : > { %v3328_v62 = vpop.eup %3327  ;;  %3331 = vtanh.f32 %v2065_v60 }
 0xbd8   : > { %v2074_v3 = vadd.f32 1.0, %v3328_v62  ;;  %v3330_v4 = vpop.eup %3329 }
 0xbd9   : > { %v2071_v8 = vadd.f32 1.0, %v3330_v4 }
 0xbda   : > { %v2078_v6 = vmul.f32 %v2074_v3, %v2046_v1 }
 0xbdb   : > { %v2075_v13 = vmul.f32 %v2071_v8, %v2043_v9 }
 0xbdc   : > { %v2080_v7 = vpack.c.bf16 %v2078_v6, %v2076_v5 }
 0xbdd   : > { %v3332_v54 = vpop.eup %3331 }
 0xbde   : > { %2235 = vmatmul.bf16.vlgmr.msra.gmra.mxu2 %v2080_v7  ;;  %v2073_v58 = vadd.f32 1.0, %v3332_v54 }
 0xbe0   : > { %v2077_v14 = vmul.f32 %v2073_v58, %v2045_v12 }
 0xbe2   : > { %v2079_v56 = vpack.c.bf16 %v2077_v14, %v2075_v13 }
 0xbe4   : > { %2221 = vmatmul.bf16.vlgmr.msra.gmra.mxu1 %v2079_v56 }
 0xc61   : > { %v2222_v15 = vpop.f32.mrf.mxu1  ;;  %v2236_v16 = vpop.f32.mrf.mxu2 }
 0xc62   : > { %v2223_v18 = vadd.f32 %v3284_v0, %v2222_v15 }
 0xc64   : > { %v2237_v19 = vadd.f32 %v2236_v16, %v2223_v18 }
 0xc66   : > { %v2241_v20 = vadd.f32 %v2237_v19, %v4260_v10 }
 0xc68   : > { %2245 = vadd.xlane.f32.xlu1 %v2241_v20 }
 0xc69   : > { %v2224_v21 = vpop.f32.mrf.mxu1  ;;  %v2238_v17 = vpop.f32.mrf.mxu2 }
 0xc6a   : > { %v2225_v23 = vadd.f32 %v3284_v0, %v2224_v21 }
 0xc6c   : > { %v2239_v24 = vadd.f32 %v2238_v17, %v2225_v23 }
 0xc6e   : > { %v2242_v25 = vadd.f32 %v2239_v24, %v4262_v11 }
 0xc70   : > { %2247 = vadd.xlane.f32.xlu0 %v2242_v25 }
 0xcdb   : > { %v2246_v47 = vpop.xlane.xlu1 %2245 }
 0xcdc   : > { %v2249_v26 = vmul.f32 %v2246_v47, %v4202_v52 }
 0xcde   : > { %v2251_v27 = vsub.f32 %v2241_v20, %v2249_v26 }
 0xce0   : > { %v2253_v28 = vmul.f32 %v2251_v27, %v2251_v27 }
 0xce2   : > { %2255 = vadd.xlane.f32.xlu2 %v2253_v28 }
 0xce3   : > { %v2248_v2 = vpop.xlane.xlu0 %2247 }
 0xce4   : > { %v2250_v29 = vmul.f32 %v2248_v2, %v4202_v52 }
 0xce6   : > { %v2252_v30 = vsub.f32 %v2242_v25, %v2250_v29 }
 0xce8   : > { %v2254_v31 = vmul.f32 %v2252_v30, %v2252_v30 }
 0xcea   : > { %2257 = vadd.xlane.f32.xlu1 %v2254_v31 }
 0xd55   : > { %v2256_v10 = vpop.xlane.xlu2 %2255 }
 0xd56   : > { %v2259_v32 = vmul.f32 %v2256_v10, %v4202_v52 }
 0xd58   : > { %v2261_v33 = vadd.f32 1e-12, %v2259_v32 }
 0xd5a   : > { %3333 = vrsqrt.f32 %v2261_v33  ;;  %vm2269_vm3 = vweird.f32 %v2261_v33 }
 0xd5d   : > { %v2258_v11 = vpop.xlane.xlu1 %2257 }
 0xd5e   : > { %v2260_v34 = vmul.f32 %v2258_v11, %v4202_v52  ;;  %v3286_v52 = vld [vmem:[%s4434_s27] ss:$0 sm:$0xff] }
 0xd60   : > { %v3334_v35 = vpop.eup %3333  ;;  %v2262_v36 = vadd.f32 1e-12, %v2260_v34 }
 0xd61   : > { %v2264_v37 = vmul.f32 %v3334_v35, %v2261_v33  ;;  %vm2270_vm2 = vweird.f32 %v3334_v35 }
 0xd62   : > { %3335 = vrsqrt.f32 %v2262_v36  ;;  %vm2271_vm4 = vmor %vm2269_vm3, %vm2270_vm2  ;;  %vm2279_vm6 = vweird.f32 %v2262_v36 }
 0xd63   : > { %v2265_v38 = vmul.f32 %v3334_v35, %v2264_v37 }
 0xd65   : > { %v2266_v22 = vmul.f32 0.5, %v2265_v38 }
 0xd67   : > { %v2267_v39 = vsub.f32 1.5, %v2266_v22 }
 0xd68   : > { %v3336_v40 = vpop.eup %3335 }
 0xd69   : > { %v2268_v42 = vmul.f32 %v3334_v35, %v2267_v39  ;;  %v2274_v43 = vmul.f32 %v3336_v40, %v2262_v36  ;;  %vm2280_vm5 = vweird.f32 %v3336_v40 }
 0xd6a   : > { %vm2281_vm7 = vmor %vm2279_vm6, %vm2280_vm5 }
 0xd6b   : > { %v2272_v46 = vsel %vm2271_vm4, %v3334_v35, %v2268_v42  ;;  %v2275_v48 = vmul.f32 %v3336_v40, %v2274_v43 }
 0xd6c   : > { %v2283_v49 = vmul.f32 %v2272_v46, %v2251_v27 }
 0xd6d   : > { %v2276_v50 = vmul.f32 0.5, %v2275_v48 }
 0xd6e   : > { %v2288_v51 = vmul.f32 %v3285_v45, %v2283_v49 }
 0xd6f   : > { %v2277_v41 = vsub.f32 1.5, %v2276_v50 }
 0xd70   : > { %v2293_v53 = vadd.f32 %v3286_v52, %v2288_v51 }
 0xd71   : > { %v2278_v44 = vmul.f32 %v3336_v40, %v2277_v41 }
 0xd72   : > { %2295 = vst [vmem:[#allocation2] sm:$0xff] %v2293_v53 }
 0xd73   : > { %v2282_v55 = vsel %vm2281_vm7, %v3336_v40, %v2278_v44 }
 0xd74   : > { %v2284_v57 = vmul.f32 %v2282_v55, %v2252_v30 }
 0xd76   : > { %v2289_v59 = vmul.f32 %v3285_v45, %v2284_v57  ;;  %2300 = sbr.rel (%p3004_p1) target bundleno = 3754 (0xeaa), region = 136 }
 0xd78   : > { %v2294_v60 = vadd.f32 %v3286_v52, %v2289_v59 }
 0xd7a   : > { %2296 = vst [vmem:[#allocation2 + $0x8] sm:$0xff] %v2294_v60 }
 0xd7b   : > { %v3147_v61 = vld [vmem:[%s4435_s19 + $0x38] sm:$0xff]  ;;  %v3146_v62 = vld [vmem:[%s4435_s19 + $0x30] sm:$0xff]  ;;  %v3154_v1 = vld [vmem:[#allocation14 + $0x30] sm:$0xff]  ;;  %v2302_v12 = vrot.slane %v2294_v60, 7  ;;  %vm2304_vm8 = vcmask 1040384  }
 0xd7c   : > { %2375 = vmatpush.bf16.msra.mxu0 %v3147_v61  ;;  %v3155_v63 = vld [vmem:[#allocation14 + $0x38] sm:$0xff]  ;;  %v3153_v4 = vld [vmem:[#allocation14 + $0x28] sm:$0xff]  ;;  %v3152_v6 = vld [vmem:[#allocation14 + $0x20] sm:$0xff] }
 0xd7d   : > { %2458 = vmatpush.bf16.msra.mxu1 %v3155_v63  ;;  %v3145_v3 = vld [vmem:[%s4435_s19 + $0x28] sm:$0xff]  ;;  %v3144_v5 = vld [vmem:[%s4435_s19 + $0x20] sm:$0xff]  ;;  %v3143_v7 = vld [vmem:[%s4435_s19 + $0x18] sm:$0xff]  ;;  %v2305_v13 = vsel %vm2304_vm8, %v2293_v53, %v2302_v12 }
 0xd7e   : > { %v3151_v8 = vld [vmem:[#allocation14 + $0x18] sm:$0xff]  ;;  %v3140_v58 = vld [vmem:[%s4435_s19] sm:$0xff]  ;;  %v2306_v14 = vpack.c.bf16 %v2305_v13, %v2305_v13  ;;  %v3148_v15 = vld [vmem:[#allocation14] sm:$0xff] }
 0xd7f   : > { %v3142_v54 = vld [vmem:[%s4435_s19 + $0x10] sm:$0xff]  ;;  %v3141_v9 = vld [vmem:[%s4435_s19 + $0x8] sm:$0xff]  ;;  %v3149_v0 = vld [vmem:[#allocation14 + $0x8] sm:$0xff] }
 0xd80   : > { %2376 = vmatpush.bf16.msra.mxu0 %v3146_v62  ;;  %v3150_v56 = vld [vmem:[#allocation14 + $0x10] sm:$0xff]  ;;  %v3337_v16 = vld [vmem:[%s4436_s21] ss:$0 sm:$0xff] }
 0xd81   : > { %2459 = vmatpush.bf16.msra.mxu1 %v3154_v1  ;;  %v3338_v17 = vld [vmem:[%s4437_s14] ss:$0 sm:$0xff] }
 0xd84   : > { %2377 = vmatpush.bf16.msra.mxu0 %v3145_v3 }
 0xd85   : > { %2460 = vmatpush.bf16.msra.mxu1 %v3153_v4 }
 0xd88   : > { %2378 = vmatpush.bf16.msra.mxu0 %v3144_v5 }
 0xd89   : > { %2461 = vmatpush.bf16.msra.mxu1 %v3152_v6 }
 0xd8c   : > { %2379 = vmatpush.bf16.msra.mxu0 %v3143_v7 }
 0xd8d   : > { %2462 = vmatpush.bf16.msra.mxu1 %v3151_v8 }
 0xd90   : > { %2380 = vmatpush.bf16.msra.mxu0 %v3142_v54 }
 0xd91   : > { %2463 = vmatpush.bf16.msra.mxu1 %v3150_v56 }
 0xd94   : > { %2381 = vmatpush.bf16.msra.mxu0 %v3141_v9 }
 0xd95   : > { %2464 = vmatpush.bf16.msra.mxu1 %v3149_v0 }
 0xd98   : > { %2382 = vmatpush.bf16.msra.mxu0 %v3140_v58 }
 0xd99   : > { %2465 = vmatpush.bf16.msra.mxu1 %v3148_v15 }
 0xd9b   : > { %2383 = vmatmul.bf16.vlgmr.msra.gmra.mxu0 %v2306_v14 }
 0xe18   : > { %v2384_v18 = vpop.f32.mrf.mxu0 }
 0xe19   : > { %v2385_v19 = vadd.f32 %v3337_v16, %v2384_v18 }
 0xe1b   : > { %3339 = vtanh.f32 %v2385_v19 }
 0xe20   : > { %v2386_v20 = vpop.f32.mrf.mxu0 }
 0xe21   : > { %v3340_v21 = vpop.eup %3339 }
 0xe22   : > { %v2389_v23 = vpack.c.bf16 %v3340_v21, %v3340_v21 }
 0xe24   : > { %2466 = vmatmul.bf16.vlgmr.msra.gmra.mxu1 %v2389_v23 }
 0xea1   : > { %v2467_v24 = vpop.f32.mrf.mxu1 }
 0xea2   : > { %v2468_v25 = vadd.f32 %v3338_v17, %v2467_v24 }
 0xea4   : > { %2471 = vst [vmem:[#allocation15] sm:$0x3] %v2468_v25 }
 0xea9   : > { %v2469_v47 = vpop.f32.mrf.mxu1 }
 0xeaa PF: > { %p3210_p4 = scmp.eq.s32.totalorder %s3773_s2, 1  ;;  %s3648_s29 = smov [#allocation15]  }
 0xeab   : > { %s2478_s30 = sshll.u32 %s3648_s29, 4  ;;  %s4438_s4 = sld [smem:[#allocation45_spill]]  ;;  %s2479_s30 = int_to_ptr.vmem [resolvable:$true] %s2478_s30 }
 0xeb1   : > { %s2480_s8 = sshll.u32 %s4438_s4, 4  ;;  %s2481_s8 = int_to_ptr.hbm [resolvable:$true] %s2480_s8 }
 0xeb2   : > { %3179 = dma.vmem_to_hbm [thread:$0]  (%p3210_p4), %s2479_s30, 32, %s2481_s8, [#allocation5]  }
 0xeb3   : > { %3616 = dma.done.wait (%p3210_p4), [#allocation5], 32  }
 0xeb4   : > { %3618 = vsyncadd (%p3210_p4), [#allocation5], 4294967264 }
 0xeb5 PF: > { %s4439_s24 = sld [smem:[#allocation24_spill]]  ;;  %s4442_s1 = smov %s3625_s22 }
 0xeb6   : > { %s4440_s28 = sld [smem:[#allocation22_spill]] }
 0xeb7   : > { %s4441_s23 = sld [smem:[#allocation25_spill]] }
 0xebb   : > { %p38_p5 = scmp.ge.s32.totalorder %s4439_s24, 4  }
 0xebc   : > { %s4443_s22 = smov %s4440_s28 }
 0xebd   :  { %40 = sbr.rel (!%p38_p5) target bundleno = 30 (0x1e), region = 224 }
 0xec2   :  { %2494 = vsyncpa [#allocation4], 1 }
 0xec3   :  { %2496 = vsyncpa [#allocation4 + $0x1], 1 }
 0xec4   :  { %2497 = vsyncpa [#allocation7], 1 }
 0xec5   :  { %2499 = vsyncpa [#allocation7 + $0x1], 1 }
 0xec6   :  { %2500 = vsyncpa [#allocation10], 1 }
 0xec7   :  { %2502 = vsyncpa [#allocation10 + $0x1], 1 }
 0xec8   :  { %2503 = vsyncpa [#allocation13], 1 }
 0xec9   :  { %2505 = vsyncpa [#allocation13 + $0x1], 1 }
 0xeca   :  { %2506 = vsyncpa [#allocation5], 1 }
 0xecb   :  { %2508 = vsyncpa [#allocation5 + $0x1], 1 }

</bundles_post_ra>
